<compile_context>
chip_gen: v5e
topology: v5e:2x2
jax: 0.10.0
libtpu: 0.0.40
codegen_flags: <defaults>
</compile_context>

<pallas_src>
import jax
import jax.numpy as jnp
import numpy as np
from jax.experimental import pallas as pl
from jax.experimental.pallas import tpu as pltpu


# ------------------------------- Pallas kernel -------------------------------

def _fused_kernel(x_ref, l1_ref, r1_ref, b1_ref, a2_ref, c2_ref, b2_ref,
                  a3_ref, c3_ref, o_ref):
    """Whole BoundaryMapping2 forward for one batch element (rows-stacked layout).

    x_ref : (1, C0*H0, W0)                       input sample (NCHW viewed as 2D)
    l1/r1 : (3, C1*H0, C0*H0) / (3, W0, W0)      conv1 (+BN scale) left/right tap matrices
    b1    : (C1*H0, 1)                           conv1 folded BN bias
    a2/c2 : (3, C2*H1, C1*H0) / (3, W0, W1)      conv2 (+BN) with 2x upsample folded in
    b2    : (C2*H1, 1)                           conv2 folded BN bias
    a3/c3 : (3, C3*H2, C2*H1) / (3, W1, W2)      conv3 with 2x upsample folded in
    o_ref : (1, C3*H2, W2)                       output sample (NCHW viewed as 2D)
    """
    def sandwich(left_ref, x, right_ref):
        acc = None
        for d in range(3):                       # static unroll over the 3 column taps
            t = jnp.dot(left_ref[d], x, preferred_element_type=jnp.float32)
            t = jnp.dot(t, right_ref[d], preferred_element_type=jnp.float32)
            acc = t if acc is None else acc + t
        return acc

    x0 = x_ref[0].astype(jnp.float32)
    y1 = jnp.maximum(sandwich(l1_ref, x0, r1_ref) + b1_ref[...], 0.0)   # conv1+BN+ReLU
    y2 = jnp.maximum(sandwich(a2_ref, y1, c2_ref) + b2_ref[...], 0.0)   # up2 -> conv2+BN+ReLU
    y3 = sandwich(a3_ref, y2, c3_ref)                                   # up2 -> conv3
    o_ref[0] = y3.astype(o_ref.dtype)


# -------------------------- host-side matrix builders ------------------------

def _col_taps(w_count):
    """3 x (W, W) column-shift matrices: (X @ R_dx)[:, j] = X[:, j+dx-1] (0 if OOB)."""
    mats = []
    for dx in range(3):
        R = np.zeros((w_count, w_count), np.float64)
        for j in range(w_count):
            k = j + dx - 1
            if 0 <= k < w_count:
                R[k, j] = 1.0
        mats.append(R)
    return mats


def _row_taps(w_hwio, scale, H):
    """3 x (Co*H, Ci*H) matrices encoding the channel mix + H taps, BN scale folded in."""
    Ci, Co = w_hwio.shape[2], w_hwio.shape[3]
    mats = []
    for dx in range(3):
        L = np.zeros((Co * H, Ci * H), np.float64)
        for dy in range(3):
            off = dy - 1
            for co in range(Co):
                for ci in range(Ci):
                    coeff = scale[co] * w_hwio[dy, dx, ci, co]
                    for h in range(H):
                        g = h + off
                        if 0 <= g < H:
                            L[co * H + h, ci * H + g] += coeff
        mats.append(L)
    return mats


def _up_matrix(n):
    """(n, 2n) bilinear 2x matrix, PyTorch align_corners=False: out[:, j] = in @ U."""
    U = np.zeros((n, 2 * n), np.float64)
    for j in range(2 * n):
        src = min(max((j + 0.5) / 2.0 - 0.5, 0.0), float(n - 1))
        lo = int(np.floor(src))
        hi = min(lo + 1, n - 1)
        frac = src - lo
        U[lo, j] += 1.0 - frac
        U[hi, j] += frac
    return U


def build_params(w1, s1, b1, w2, s2, b2, w3, H, W):
    """Fold BN into conv weights and the two upsamples into conv2/conv3 matrices."""
    w1 = np.asarray(w1, np.float64); s1 = np.asarray(s1, np.float64); b1 = np.asarray(b1, np.float64)
    w2 = np.asarray(w2, np.float64); s2 = np.asarray(s2, np.float64); b2 = np.asarray(b2, np.float64)
    w3 = np.asarray(w3, np.float64)

    C1, C2, C3 = w1.shape[3], w2.shape[3], w3.shape[3]
    H0, W0 = H, W
    H1, W1 = 2 * H0, 2 * W0

    # conv1 at (H0, W0)
    L1 = _row_taps(w1, s1, H0)
    R1 = _col_taps(W0)

    # upsample #1 folded into conv2 (conv2 operates at (H1, W1))
    B1 = np.kron(np.eye(C1), _up_matrix(H0).T)          # (C1*H1, C1*H0)
    UW1 = _up_matrix(W0)                                 # (W0, W1)
    L2 = _row_taps(w2, s2, H1)
    R2 = _col_taps(W1)
    A2 = [l @ B1 for l in L2]                            # (C2*H1, C1*H0)
    C2m = [UW1 @ r for r in R2]                          # (W0, W1)

    # upsample #2 folded into conv3 (conv3 operates at (H2, W2), no BN)
    H2, W2 = 2 * H1, 2 * W1
    B2 = np.kron(np.eye(C2), _up_matrix(H1).T)           # (C2*H2, C2*H1)
    UW2 = _up_matrix(W1)                                  # (W1, W2)
    L3 = _row_taps(w3, np.ones(C3, np.float64), H2)
    R3 = _col_taps(W2)
    A3 = [l @ B2 for l in L3]                             # (C3*H2, C2*H1)
    C3m = [UW2 @ r for r in R3]                           # (W1, W2)

    f32 = lambda a: jnp.asarray(np.asarray(a, np.float32))
    return dict(
        L1=f32(np.stack(L1)), R1=f32(np.stack(R1)), b1=f32(np.repeat(b1, H0)[:, None]),
        A2=f32(np.stack(A2)), C2=f32(np.stack(C2m)), b2=f32(np.repeat(b2, H1)[:, None]),
        A3=f32(np.stack(A3)), C3=f32(np.stack(C3m)),
    )


# ------------------------------- pallas wrapper -------------------------------

def boundary_mapping2(x_nchw, params):
    """Forward pass of BoundaryMapping2. Input/output NCHW like the PyTorch module."""
    N, C0, H0, W0 = x_nchw.shape
    L1, R1, b1 = params["L1"], params["R1"], params["b1"]
    A2, C2, b2 = params["A2"], params["C2"], params["b2"]
    A3, C3 = params["A3"], params["C3"]
    rows_out, cols_out = A3.shape[1], C3.shape[2]        # C_out*4H0, 4W0
    c_out = rows_out // (4 * H0)

    x2 = x_nchw.reshape(N, C0 * H0, W0).astype(jnp.float32)   # free reshape, no transpose

    out = pl.pallas_call(
        _fused_kernel,
        out_shape=jax.ShapeDtypeStruct((N, rows_out, cols_out), jnp.float32),
        grid=(N,),
        in_specs=[
            pl.BlockSpec((1, C0 * H0, W0), lambda n: (n, 0, 0)),
            pl.BlockSpec(L1.shape, lambda n: (0, 0, 0)),
            pl.BlockSpec(R1.shape, lambda n: (0, 0, 0)),
            pl.BlockSpec(b1.shape, lambda n: (0, 0)),
            pl.BlockSpec(A2.shape, lambda n: (0, 0, 0)),
            pl.BlockSpec(C2.shape, lambda n: (0, 0, 0)),
            pl.BlockSpec(b2.shape, lambda n: (0, 0)),
            pl.BlockSpec(A3.shape, lambda n: (0, 0, 0)),
            pl.BlockSpec(C3.shape, lambda n: (0, 0, 0)),
        ],
        out_specs=pl.BlockSpec((1, rows_out, cols_out), lambda n: (n, 0, 0)),
        compiler_params=pltpu.CompilerParams(dimension_semantics=("parallel",)),
    )(x2, L1, R1, b1, A2, C2, b2, A3, C3)

    return out.reshape(N, c_out, 4 * H0, 4 * W0)          # free reshape back to NCHW


# ------------------------------ pure-JAX reference ----------------------------

def _ref_conv(x, w, s, b, relu):
    y = jax.lax.conv_general_dilated(
        x, w, (1, 1), "SAME", dimension_numbers=("NHWC", "HWIO", "NHWC"),
        precision=jax.lax.Precision.HIGHEST)
    y = y * s + b
    return jnp.maximum(y, 0.0) if relu else y


def _ref_up(x):
    def axis_up(x, axis):
        n = x.shape[axis]
        src = (jnp.arange(2 * n, dtype=jnp.float32) + 0.5) / 2.0 - 0.5
        src = jnp.clip(src, 0.0, n - 1)
        lo = jnp.floor(src).astype(jnp.int32)
        hi = jnp.minimum(lo + 1, n - 1)
        frac = src - lo.astype(jnp.float32)
        shape = [1] * x.ndim
        shape[axis] = -1
        frac = frac.reshape(shape)
        return jnp.take(x, lo, axis=axis) * (1 - frac) + jnp.take(x, hi, axis=axis) * frac
    return axis_up(axis_up(x, 1), 2)


def _ref_forward(x_nchw, w1, s1, b1, w2, s2, b2, w3):
    x = jnp.transpose(x_nchw, (0, 2, 3, 1))
    y = _ref_conv(x, w1, s1, b1, True)
    y = _ref_up(y)
    y = _ref_conv(y, w2, s2, b2, True)
    y = _ref_up(y)
    co = w3.shape[-1]
    y = _ref_conv(y, w3, jnp.ones((co,)), jnp.zeros((co,)), False)
    return jnp.transpose(y, (0, 3, 1, 2))


# ----------------------------------- main --------------------------------------

if __name__ == "__main__":
    key = jax.random.PRNGKey(0)
    N, C, H, W = 2, 8, 16, 16          # num_input = 8
    num_output = 1
    c1, c2 = C // 2, C // 4

    ks = jax.random.split(key, 12)
    x = jax.random.normal(ks[0], (N, C, H, W), jnp.float32)

    def bn_fold(kg, kb, km, kv, c):
        gamma = 1.0 + 0.1 * jax.random.normal(kg, (c,), jnp.float32)
        beta = 0.1 * jax.random.normal(kb, (c,), jnp.float32)
        mean = 0.1 * jax.random.normal(km, (c,), jnp.float32)
        var = jnp.abs(jax.random.normal(kv, (c,), jnp.float32)) + 0.5
        eps = 1e-5
        scale = gamma / jnp.sqrt(var + eps)
        return scale, beta - mean * scale

    # conv weights in HWIO layout (kh, kw, in_ch, out_ch), bias-free like the module
    w1 = 0.1 * jax.random.normal(ks[1], (3, 3, C, c1), jnp.float32)
    w2 = 0.1 * jax.random.normal(ks[2], (3, 3, c1, c2), jnp.float32)
    w3 = 0.1 * jax.random.normal(ks[3], (3, 3, c2, num_output), jnp.float32)
    # TODO(synk): BatchNorm uses eval-mode (running) statistics folded to scale/bias;
    # training-mode batch statistics are not reproduced.
    s1, b1 = bn_fold(ks[4], ks[5], ks[6], ks[7], c1)
    s2, b2 = bn_fold(ks[8], ks[9], ks[10], ks[11], c2)

    params = build_params(w1, s1, b1, w2, s2, b2, w3, H, W)
    out = jax.block_until_ready(boundary_mapping2(x, params))
    assert out.shape == (N, num_output, 4 * H, 4 * W), out.shape

    ref = jax.block_until_ready(_ref_forward(x, w1, s1, b1, w2, s2, b2, w3))
    np.testing.assert_allclose(np.asarray(out), np.asarray(ref), atol=1e-3, rtol=1e-3)

    print("KERNEL_OK")
</pallas_src>

<mosaic_0001>
module attributes {stable_mosaic.version = 11 : i64} {
  func.func @_fused_kernel(%arg0: i32, %arg1: memref<1x128x16xf32, #tpu.memory_space<vmem>>, %arg2: memref<3x64x128xf32, #tpu.memory_space<vmem>>, %arg3: memref<3x16x16xf32, #tpu.memory_space<vmem>>, %arg4: memref<64x1xf32, #tpu.memory_space<vmem>>, %arg5: memref<3x64x64xf32, #tpu.memory_space<vmem>>, %arg6: memref<3x16x32xf32, #tpu.memory_space<vmem>>, %arg7: memref<64x1xf32, #tpu.memory_space<vmem>>, %arg8: memref<3x64x64xf32, #tpu.memory_space<vmem>>, %arg9: memref<3x32x64xf32, #tpu.memory_space<vmem>>, %arg10: memref<1x64x64xf32, #tpu.memory_space<vmem>>) attributes {dimension_semantics = [#tpu.dimension_semantics<parallel>], iteration_bounds = array<i64: 2>, scalar_prefetch = 0 : i64, scratch_operands = 0 : i64, tpu.core_type = #tpu.core_type<tc>, window_params = [{transform_indices = @transform_0, window_bounds = array<i64: 1, 128, 16>}, {pipeline_mode = #tpu.pipeline_mode<synchronous>, transform_indices = @transform_1, window_bounds = array<i64: 3, 64, 128>}, {pipeline_mode = #tpu.pipeline_mode<synchronous>, transform_indices = @transform_2, window_bounds = array<i64: 3, 16, 16>}, {pipeline_mode = #tpu.pipeline_mode<synchronous>, transform_indices = @transform_3, window_bounds = array<i64: 64, 1>}, {pipeline_mode = #tpu.pipeline_mode<synchronous>, transform_indices = @transform_4, window_bounds = array<i64: 3, 64, 64>}, {pipeline_mode = #tpu.pipeline_mode<synchronous>, transform_indices = @transform_5, window_bounds = array<i64: 3, 16, 32>}, {pipeline_mode = #tpu.pipeline_mode<synchronous>, transform_indices = @transform_6, window_bounds = array<i64: 64, 1>}, {pipeline_mode = #tpu.pipeline_mode<synchronous>, transform_indices = @transform_7, window_bounds = array<i64: 3, 64, 64>}, {pipeline_mode = #tpu.pipeline_mode<synchronous>, transform_indices = @transform_8, window_bounds = array<i64: 3, 32, 64>}, {transform_indices = @transform_9, window_bounds = array<i64: 1, 64, 64>}]} {
    %c0 = arith.constant 0 : index
    %c0_0 = arith.constant 0 : index
    %c0_1 = arith.constant 0 : index
    %0 = vector.load %arg1[%c0, %c0_0, %c0_1] : memref<1x128x16xf32, #tpu.memory_space<vmem>>, vector<1x128x16xf32>
    %1 = vector.shape_cast %0 : vector<1x128x16xf32> to vector<128x16xf32>
    %c0_2 = arith.constant 0 : index
    %c0_3 = arith.constant 0 : index
    %c0_4 = arith.constant 0 : index
    %2 = vector.load %arg2[%c0_2, %c0_3, %c0_4] : memref<3x64x128xf32, #tpu.memory_space<vmem>>, vector<1x64x128xf32>
    %3 = vector.shape_cast %2 : vector<1x64x128xf32> to vector<64x128xf32>
    %cst = arith.constant dense<0.000000e+00> : vector<64x16xf32>
    %4 = tpu.matmul %3, %1, %cst {dimension_numbers = #tpu.dot_dimension_numbers<[1], [0], [0], [1], [0, 0, 1, 1], [], []>} : vector<64x128xf32>, vector<128x16xf32>, vector<64x16xf32> -> vector<64x16xf32>
    %c0_5 = arith.constant 0 : index
    %c0_6 = arith.constant 0 : index
    %c0_7 = arith.constant 0 : index
    %5 = vector.load %arg3[%c0_5, %c0_6, %c0_7] : memref<3x16x16xf32, #tpu.memory_space<vmem>>, vector<1x16x16xf32>
    %6 = vector.shape_cast %5 : vector<1x16x16xf32> to vector<16x16xf32>
    %cst_8 = arith.constant dense<0.000000e+00> : vector<64x16xf32>
    %7 = tpu.matmul %4, %6, %cst_8 {dimension_numbers = #tpu.dot_dimension_numbers<[1], [0], [0], [1], [0, 0, 1, 1], [], []>} : vector<64x16xf32>, vector<16x16xf32>, vector<64x16xf32> -> vector<64x16xf32>
    %c1 = arith.constant 1 : index
    %c0_9 = arith.constant 0 : index
    %c0_10 = arith.constant 0 : index
    %8 = vector.load %arg2[%c1, %c0_9, %c0_10] : memref<3x64x128xf32, #tpu.memory_space<vmem>>, vector<1x64x128xf32>
    %9 = vector.shape_cast %8 : vector<1x64x128xf32> to vector<64x128xf32>
    %cst_11 = arith.constant dense<0.000000e+00> : vector<64x16xf32>
    %10 = tpu.matmul %9, %1, %cst_11 {dimension_numbers = #tpu.dot_dimension_numbers<[1], [0], [0], [1], [0, 0, 1, 1], [], []>} : vector<64x128xf32>, vector<128x16xf32>, vector<64x16xf32> -> vector<64x16xf32>
    %c1_12 = arith.constant 1 : index
    %c0_13 = arith.constant 0 : index
    %c0_14 = arith.constant 0 : index
    %11 = vector.load %arg3[%c1_12, %c0_13, %c0_14] : memref<3x16x16xf32, #tpu.memory_space<vmem>>, vector<1x16x16xf32>
    %12 = vector.shape_cast %11 : vector<1x16x16xf32> to vector<16x16xf32>
    %cst_15 = arith.constant dense<0.000000e+00> : vector<64x16xf32>
    %13 = tpu.matmul %10, %12, %cst_15 {dimension_numbers = #tpu.dot_dimension_numbers<[1], [0], [0], [1], [0, 0, 1, 1], [], []>} : vector<64x16xf32>, vector<16x16xf32>, vector<64x16xf32> -> vector<64x16xf32>
    %14 = arith.addf %7, %13 : vector<64x16xf32>
    %c2 = arith.constant 2 : index
    %c0_16 = arith.constant 0 : index
    %c0_17 = arith.constant 0 : index
    %15 = vector.load %arg2[%c2, %c0_16, %c0_17] : memref<3x64x128xf32, #tpu.memory_space<vmem>>, vector<1x64x128xf32>
    %16 = vector.shape_cast %15 : vector<1x64x128xf32> to vector<64x128xf32>
    %cst_18 = arith.constant dense<0.000000e+00> : vector<64x16xf32>
    %17 = tpu.matmul %16, %1, %cst_18 {dimension_numbers = #tpu.dot_dimension_numbers<[1], [0], [0], [1], [0, 0, 1, 1], [], []>} : vector<64x128xf32>, vector<128x16xf32>, vector<64x16xf32> -> vector<64x16xf32>
    %c2_19 = arith.constant 2 : index
    %c0_20 = arith.constant 0 : index
    %c0_21 = arith.constant 0 : index
    %18 = vector.load %arg3[%c2_19, %c0_20, %c0_21] : memref<3x16x16xf32, #tpu.memory_space<vmem>>, vector<1x16x16xf32>
    %19 = vector.shape_cast %18 : vector<1x16x16xf32> to vector<16x16xf32>
    %cst_22 = arith.constant dense<0.000000e+00> : vector<64x16xf32>
    %20 = tpu.matmul %17, %19, %cst_22 {dimension_numbers = #tpu.dot_dimension_numbers<[1], [0], [0], [1], [0, 0, 1, 1], [], []>} : vector<64x16xf32>, vector<16x16xf32>, vector<64x16xf32> -> vector<64x16xf32>
    %21 = arith.addf %14, %20 : vector<64x16xf32>
    %c0_23 = arith.constant 0 : index
    %c0_24 = arith.constant 0 : index
    %22 = vector.load %arg4[%c0_23, %c0_24] : memref<64x1xf32, #tpu.memory_space<vmem>>, vector<64x1xf32>
    %23 = vector.broadcast %22 : vector<64x1xf32> to vector<64x16xf32>
    %24 = arith.addf %21, %23 : vector<64x16xf32>
    %cst_25 = arith.constant 0.000000e+00 : f32
    %25 = vector.broadcast %cst_25 : f32 to vector<64x16xf32>
    %26 = arith.maximumf %24, %25 : vector<64x16xf32>
    %c0_26 = arith.constant 0 : index
    %c0_27 = arith.constant 0 : index
    %c0_28 = arith.constant 0 : index
    %27 = vector.load %arg5[%c0_26, %c0_27, %c0_28] : memref<3x64x64xf32, #tpu.memory_space<vmem>>, vector<1x64x64xf32>
    %28 = vector.shape_cast %27 : vector<1x64x64xf32> to vector<64x64xf32>
    %cst_29 = arith.constant dense<0.000000e+00> : vector<64x16xf32>
    %29 = tpu.matmul %28, %26, %cst_29 {dimension_numbers = #tpu.dot_dimension_numbers<[1], [0], [0], [1], [0, 0, 1, 1], [], []>} : vector<64x64xf32>, vector<64x16xf32>, vector<64x16xf32> -> vector<64x16xf32>
    %c0_30 = arith.constant 0 : index
    %c0_31 = arith.constant 0 : index
    %c0_32 = arith.constant 0 : index
    %30 = vector.load %arg6[%c0_30, %c0_31, %c0_32] : memref<3x16x32xf32, #tpu.memory_space<vmem>>, vector<1x16x32xf32>
    %31 = vector.shape_cast %30 : vector<1x16x32xf32> to vector<16x32xf32>
    %cst_33 = arith.constant dense<0.000000e+00> : vector<64x32xf32>
    %32 = tpu.matmul %29, %31, %cst_33 {dimension_numbers = #tpu.dot_dimension_numbers<[1], [0], [0], [1], [0, 0, 1, 1], [], []>} : vector<64x16xf32>, vector<16x32xf32>, vector<64x32xf32> -> vector<64x32xf32>
    %c1_34 = arith.constant 1 : index
    %c0_35 = arith.constant 0 : index
    %c0_36 = arith.constant 0 : index
    %33 = vector.load %arg5[%c1_34, %c0_35, %c0_36] : memref<3x64x64xf32, #tpu.memory_space<vmem>>, vector<1x64x64xf32>
    %34 = vector.shape_cast %33 : vector<1x64x64xf32> to vector<64x64xf32>
    %cst_37 = arith.constant dense<0.000000e+00> : vector<64x16xf32>
    %35 = tpu.matmul %34, %26, %cst_37 {dimension_numbers = #tpu.dot_dimension_numbers<[1], [0], [0], [1], [0, 0, 1, 1], [], []>} : vector<64x64xf32>, vector<64x16xf32>, vector<64x16xf32> -> vector<64x16xf32>
    %c1_38 = arith.constant 1 : index
    %c0_39 = arith.constant 0 : index
    %c0_40 = arith.constant 0 : index
    %36 = vector.load %arg6[%c1_38, %c0_39, %c0_40] : memref<3x16x32xf32, #tpu.memory_space<vmem>>, vector<1x16x32xf32>
    %37 = vector.shape_cast %36 : vector<1x16x32xf32> to vector<16x32xf32>
    %cst_41 = arith.constant dense<0.000000e+00> : vector<64x32xf32>
    %38 = tpu.matmul %35, %37, %cst_41 {dimension_numbers = #tpu.dot_dimension_numbers<[1], [0], [0], [1], [0, 0, 1, 1], [], []>} : vector<64x16xf32>, vector<16x32xf32>, vector<64x32xf32> -> vector<64x32xf32>
    %39 = arith.addf %32, %38 : vector<64x32xf32>
    %c2_42 = arith.constant 2 : index
    %c0_43 = arith.constant 0 : index
    %c0_44 = arith.constant 0 : index
    %40 = vector.load %arg5[%c2_42, %c0_43, %c0_44] : memref<3x64x64xf32, #tpu.memory_space<vmem>>, vector<1x64x64xf32>
    %41 = vector.shape_cast %40 : vector<1x64x64xf32> to vector<64x64xf32>
    %cst_45 = arith.constant dense<0.000000e+00> : vector<64x16xf32>
    %42 = tpu.matmul %41, %26, %cst_45 {dimension_numbers = #tpu.dot_dimension_numbers<[1], [0], [0], [1], [0, 0, 1, 1], [], []>} : vector<64x64xf32>, vector<64x16xf32>, vector<64x16xf32> -> vector<64x16xf32>
    %c2_46 = arith.constant 2 : index
    %c0_47 = arith.constant 0 : index
    %c0_48 = arith.constant 0 : index
    %43 = vector.load %arg6[%c2_46, %c0_47, %c0_48] : memref<3x16x32xf32, #tpu.memory_space<vmem>>, vector<1x16x32xf32>
    %44 = vector.shape_cast %43 : vector<1x16x32xf32> to vector<16x32xf32>
    %cst_49 = arith.constant dense<0.000000e+00> : vector<64x32xf32>
    %45 = tpu.matmul %42, %44, %cst_49 {dimension_numbers = #tpu.dot_dimension_numbers<[1], [0], [0], [1], [0, 0, 1, 1], [], []>} : vector<64x16xf32>, vector<16x32xf32>, vector<64x32xf32> -> vector<64x32xf32>
    %46 = arith.addf %39, %45 : vector<64x32xf32>
    %c0_50 = arith.constant 0 : index
    %c0_51 = arith.constant 0 : index
    %47 = vector.load %arg7[%c0_50, %c0_51] : memref<64x1xf32, #tpu.memory_space<vmem>>, vector<64x1xf32>
    %48 = vector.broadcast %47 : vector<64x1xf32> to vector<64x32xf32>
    %49 = arith.addf %46, %48 : vector<64x32xf32>
    %cst_52 = arith.constant 0.000000e+00 : f32
    %50 = vector.broadcast %cst_52 : f32 to vector<64x32xf32>
    %51 = arith.maximumf %49, %50 : vector<64x32xf32>
    %c0_53 = arith.constant 0 : index
    %c0_54 = arith.constant 0 : index
    %c0_55 = arith.constant 0 : index
    %52 = vector.load %arg8[%c0_53, %c0_54, %c0_55] : memref<3x64x64xf32, #tpu.memory_space<vmem>>, vector<1x64x64xf32>
    %53 = vector.shape_cast %52 : vector<1x64x64xf32> to vector<64x64xf32>
    %cst_56 = arith.constant dense<0.000000e+00> : vector<64x32xf32>
    %54 = tpu.matmul %53, %51, %cst_56 {dimension_numbers = #tpu.dot_dimension_numbers<[1], [0], [0], [1], [0, 0, 1, 1], [], []>} : vector<64x64xf32>, vector<64x32xf32>, vector<64x32xf32> -> vector<64x32xf32>
    %c0_57 = arith.constant 0 : index
    %c0_58 = arith.constant 0 : index
    %c0_59 = arith.constant 0 : index
    %55 = vector.load %arg9[%c0_57, %c0_58, %c0_59] : memref<3x32x64xf32, #tpu.memory_space<vmem>>, vector<1x32x64xf32>
    %56 = vector.shape_cast %55 : vector<1x32x64xf32> to vector<32x64xf32>
    %cst_60 = arith.constant dense<0.000000e+00> : vector<64x64xf32>
    %57 = tpu.matmul %54, %56, %cst_60 {dimension_numbers = #tpu.dot_dimension_numbers<[1], [0], [0], [1], [0, 0, 1, 1], [], []>} : vector<64x32xf32>, vector<32x64xf32>, vector<64x64xf32> -> vector<64x64xf32>
    %c1_61 = arith.constant 1 : index
    %c0_62 = arith.constant 0 : index
    %c0_63 = arith.constant 0 : index
    %58 = vector.load %arg8[%c1_61, %c0_62, %c0_63] : memref<3x64x64xf32, #tpu.memory_space<vmem>>, vector<1x64x64xf32>
    %59 = vector.shape_cast %58 : vector<1x64x64xf32> to vector<64x64xf32>
    %cst_64 = arith.constant dense<0.000000e+00> : vector<64x32xf32>
    %60 = tpu.matmul %59, %51, %cst_64 {dimension_numbers = #tpu.dot_dimension_numbers<[1], [0], [0], [1], [0, 0, 1, 1], [], []>} : vector<64x64xf32>, vector<64x32xf32>, vector<64x32xf32> -> vector<64x32xf32>
    %c1_65 = arith.constant 1 : index
    %c0_66 = arith.constant 0 : index
    %c0_67 = arith.constant 0 : index
    %61 = vector.load %arg9[%c1_65, %c0_66, %c0_67] : memref<3x32x64xf32, #tpu.memory_space<vmem>>, vector<1x32x64xf32>
    %62 = vector.shape_cast %61 : vector<1x32x64xf32> to vector<32x64xf32>
    %cst_68 = arith.constant dense<0.000000e+00> : vector<64x64xf32>
    %63 = tpu.matmul %60, %62, %cst_68 {dimension_numbers = #tpu.dot_dimension_numbers<[1], [0], [0], [1], [0, 0, 1, 1], [], []>} : vector<64x32xf32>, vector<32x64xf32>, vector<64x64xf32> -> vector<64x64xf32>
    %64 = arith.addf %57, %63 : vector<64x64xf32>
    %c2_69 = arith.constant 2 : index
    %c0_70 = arith.constant 0 : index
    %c0_71 = arith.constant 0 : index
    %65 = vector.load %arg8[%c2_69, %c0_70, %c0_71] : memref<3x64x64xf32, #tpu.memory_space<vmem>>, vector<1x64x64xf32>
    %66 = vector.shape_cast %65 : vector<1x64x64xf32> to vector<64x64xf32>
    %cst_72 = arith.constant dense<0.000000e+00> : vector<64x32xf32>
    %67 = tpu.matmul %66, %51, %cst_72 {dimension_numbers = #tpu.dot_dimension_numbers<[1], [0], [0], [1], [0, 0, 1, 1], [], []>} : vector<64x64xf32>, vector<64x32xf32>, vector<64x32xf32> -> vector<64x32xf32>
    %c2_73 = arith.constant 2 : index
    %c0_74 = arith.constant 0 : index
    %c0_75 = arith.constant 0 : index
    %68 = vector.load %arg9[%c2_73, %c0_74, %c0_75] : memref<3x32x64xf32, #tpu.memory_space<vmem>>, vector<1x32x64xf32>
    %69 = vector.shape_cast %68 : vector<1x32x64xf32> to vector<32x64xf32>
    %cst_76 = arith.constant dense<0.000000e+00> : vector<64x64xf32>
    %70 = tpu.matmul %67, %69, %cst_76 {dimension_numbers = #tpu.dot_dimension_numbers<[1], [0], [0], [1], [0, 0, 1, 1], [], []>} : vector<64x32xf32>, vector<32x64xf32>, vector<64x64xf32> -> vector<64x64xf32>
    %71 = arith.addf %64, %70 : vector<64x64xf32>
    %c0_77 = arith.constant 0 : index
    %c0_78 = arith.constant 0 : index
    %c0_79 = arith.constant 0 : index
    %72 = vector.load %arg10[%c0_77, %c0_78, %c0_79] : memref<1x64x64xf32, #tpu.memory_space<vmem>>, vector<1x64x64xf32>
    %73 = vector.shape_cast %72 : vector<1x64x64xf32> to vector<64x64xf32>
    %74 = vector.shape_cast %71 : vector<64x64xf32> to vector<1x64x64xf32>
    tpu.vector_store %arg10[%c0_77, %c0_78, %c0_79], %74 {strides = array<i32>} : memref<1x64x64xf32, #tpu.memory_space<vmem>>, vector<1x64x64xf32>,
    return
  }
  func.func @transform_0(%arg0: i32) -> (i32, i32, i32) {
    %c0_i32 = arith.constant 0 : i32
    %c0_i32_0 = arith.constant 0 : i32
    %c0_i32_1 = arith.constant 0 : i32
    return %arg0, %c0_i32, %c0_i32_0 : i32, i32, i32
  }
  func.func @transform_1(%arg0: i32) -> (i32, i32, i32) {
    %c0_i32 = arith.constant 0 : i32
    %c0_i32_0 = arith.constant 0 : i32
    %c0_i32_1 = arith.constant 0 : i32
    %c0_i32_2 = arith.constant 0 : i32
    return %c0_i32, %c0_i32_0, %c0_i32_1 : i32, i32, i32
  }
  func.func @transform_2(%arg0: i32) -> (i32, i32, i32) {
    %c0_i32 = arith.constant 0 : i32
    %c0_i32_0 = arith.constant 0 : i32
    %c0_i32_1 = arith.constant 0 : i32
    %c0_i32_2 = arith.constant 0 : i32
    return %c0_i32, %c0_i32_0, %c0_i32_1 : i32, i32, i32
  }
  func.func @transform_3(%arg0: i32) -> (i32, i32) {
    %c0_i32 = arith.constant 0 : i32
    %c0_i32_0 = arith.constant 0 : i32
    %c0_i32_1 = arith.constant 0 : i32
    return %c0_i32, %c0_i32_0 : i32, i32
  }
  func.func @transform_4(%arg0: i32) -> (i32, i32, i32) {
    %c0_i32 = arith.constant 0 : i32
    %c0_i32_0 = arith.constant 0 : i32
    %c0_i32_1 = arith.constant 0 : i32
    %c0_i32_2 = arith.constant 0 : i32
    return %c0_i32, %c0_i32_0, %c0_i32_1 : i32, i32, i32
  }
  func.func @transform_5(%arg0: i32) -> (i32, i32, i32) {
    %c0_i32 = arith.constant 0 : i32
    %c0_i32_0 = arith.constant 0 : i32
    %c0_i32_1 = arith.constant 0 : i32
    %c0_i32_2 = arith.constant 0 : i32
    return %c0_i32, %c0_i32_0, %c0_i32_1 : i32, i32, i32
  }
  func.func @transform_6(%arg0: i32) -> (i32, i32) {
    %c0_i32 = arith.constant 0 : i32
    %c0_i32_0 = arith.constant 0 : i32
    %c0_i32_1 = arith.constant 0 : i32
    return %c0_i32, %c0_i32_0 : i32, i32
  }
  func.func @transform_7(%arg0: i32) -> (i32, i32, i32) {
    %c0_i32 = arith.constant 0 : i32
    %c0_i32_0 = arith.constant 0 : i32
    %c0_i32_1 = arith.constant 0 : i32
    %c0_i32_2 = arith.constant 0 : i32
    return %c0_i32, %c0_i32_0, %c0_i32_1 : i32, i32, i32
  }
  func.func @transform_8(%arg0: i32) -> (i32, i32, i32) {
    %c0_i32 = arith.constant 0 : i32
    %c0_i32_0 = arith.constant 0 : i32
    %c0_i32_1 = arith.constant 0 : i32
    %c0_i32_2 = arith.constant 0 : i32
    return %c0_i32, %c0_i32_0, %c0_i32_1 : i32, i32, i32
  }
  func.func @transform_9(%arg0: i32) -> (i32, i32, i32) {
    %c0_i32 = arith.constant 0 : i32
    %c0_i32_0 = arith.constant 0 : i32
    %c0_i32_1 = arith.constant 0 : i32
    return %arg0, %c0_i32, %c0_i32_0 : i32, i32, i32
  }
}

</mosaic_0001>

<bundles_post_ra>
// kernel: tpu_custom_call.1
= control target key start
LH: loop header
LB: loop body
LE: loop exit
PB: predicated region body
PF: predicated region fallthrough
CT: control target
= control target key end

     0   :  { %14 = vsyncpa [#allocation3], 0  ;;  %s2836_s0 = inlined_call_operand.vmem [shape: f32[2,128,16], index: 0, kind: input, shape index: {}]   ;;  %s2837_s1 = inlined_call_operand.vmem [shape: f32[3,64,128], index: 1, kind: input, shape index: {}]   ;;  %s2838_s2 = inlined_call_operand.vmem [shape: f32[3,16,16], index: 2, kind: input, shape index: {}]   ;;  %s2839_s3 = inlined_call_operand.vmem [shape: f32[64,1], index: 3, kind: input, shape index: {}]   ;;  %s2840_s4 = inlined_call_operand.hbm [shape: f32[3,64,64], index: 4, kind: input, shape index: {}]   ;;  %s2841_s5 = inlined_call_operand.vmem [shape: f32[3,16,32], index: 5, kind: input, shape index: {}]   ;;  %s2842_s6 = inlined_call_operand.vmem [shape: f32[64,1], index: 6, kind: input, shape index: {}]   ;;  %s2843_s7 = inlined_call_operand.hbm [shape: f32[3,64,64], index: 7, kind: input, shape index: {}]   ;;  %s2844_s8 = inlined_call_operand.vmem [shape: f32[3,32,64], index: 8, kind: input, shape index: {}]   ;;  %s2845_s9 = inlined_call_operand.hbm [shape: f32[2,64,64], index: 9, kind: output, shape index: {}]  }
   0x1   :  { %15 = vsyncpa [#allocation6], 0 }
   0x2   :  { %16 = vsyncpa [#allocation4], 0 }
   0x3   :  { %18 = vsyncpa [#allocation4 + $0x1], 0  ;;  %s2281_s30 = smov 0   ;;  %s2283_s10 = smov 0  }
   0x4   :  { %s2285_s11 = smov 0   ;;  %s2287_s12 = smov 0  }
   0x5 LB: > { %s2302_s13 = sadd.s32 4294967295, %s2222_s12   ;;  %s1850_s14 = sadd.s32 4294967294, %s2222_s12   ;;  %s2222_s12 = sphi %s2287_s12, %s2852_s12   ;;  %s2218_s11 = sphi %s2285_s11, %s2851_s11   ;;  %s2214_s10 = sphi %s2283_s10, %s2850_s10   ;;  %s2210_s30 = sphi %s2281_s30, %s2849_s30  }
   0x6   : > { %s2306_s15 = sadd.s32 1, %s2222_s12   ;;  %s225_s16 = sadd.s32 1, %s2218_s11 }
   0x7   : > { %s222_s17 = ssub.s32 %s2222_s12, %s2306_s15  ;;  %p235_p0 = scmp.ne.s32.totalorder %s2218_s11, %s2214_s10 }
   0x8   : > { %p223_p1 = scmp.eq.s32.totalorder %s222_s17, 0  ;;  %p236_p2 = scmp.eq.s32.totalorder %s2302_s13, 1 }
   0x9   : > { %p241_p3 = scmp.ne.s32.totalorder %s2214_s10, %s2210_s30  ;;  %p242_p4 = scmp.eq.s32.totalorder %s1850_s14, 1 }
   0xa   : > { %s2317_s18 = scalar_select %p223_p1, %s2218_s11, %s225_s16  }
   0xb   : > { %p2319_p5 = por %p236_p2, %p235_p0  ;;  %p2323_p6 = por %p242_p4, %p241_p3 }
   0xc   : > { %p1851_p7 = scmp.ge.s32.totalorder %s2222_s12, 1  ;;  %p249_p8 = scmp.lt.s32.totalorder %s2222_s12, 3 }
   0xd   : > { %p2045_p9 = scmp.eq.s32.totalorder %s2302_s13, 0  ;;  %s269_s24 = sshll.u32 %s2840_s4, 4  ;;  %s270_s24 = int_to_ptr.hbm [resolvable:$true] %s269_s24 }
   0xe   : > { %p2330_p10 = pnand %p1851_p7, %p249_p8  ;;  %s2224_s25 = smov [#allocation2]  }
   0xf   : > { %s271_s26 = sshll.u32 %s2224_s25, 4  ;;  %s289_s29 = sshll.u32 %s2843_s7, 4  ;;  %s272_s26 = int_to_ptr.vmem [resolvable:$true] %s271_s26  ;;  %s290_s29 = int_to_ptr.hbm [resolvable:$true] %s289_s29 }
  0x10   : > { %p2034_p11 = pneg %p2330_p10  ;;  %s2225_s14 = smov 128  }
  0x11   : > { %s2226_s16 = smov 8   ;;  %s2227_s17 = smov [#allocation5]  }
  0x12   : > { %p2035_p12 = pnand %p2045_p9, %p2034_p11  ;;  %s291_s22 = sshll.u32 %s2227_s17, 4  ;;  %s292_s22 = int_to_ptr.vmem [resolvable:$true] %s291_s22 }
  0x13   : > { %318 = sbr.rel (%p2330_p10) target bundleno = 1379 (0x563), region = 56 }
  0x14   : > { %2037 = dma.hbm_to_vmem [thread:$0]  (!%p2035_p12), %s270_s24, 3072, %s272_s26, [#allocation3], %s2225_s14, %s2225_s14, %s2226_s16  }
  0x15   : > { %2040 = dma.hbm_to_vmem [thread:$0]  (!%p2035_p12), %s290_s29, 3072, %s292_s22, [#allocation6], %s2225_s14, %s2225_s14, %s2226_s16  }
  0x18   : > { %2197 = dma.done.wait (%p2045_p9), [#allocation3], 3072  }
  0x19   : > { %2199 = vsyncadd (%p2045_p9), [#allocation3], 4294964224 }
  0x1a   : > { %2201 = dma.done.wait (%p2045_p9), [#allocation6], 3072  }
  0x1b   : > { %2203 = vsyncadd (%p2045_p9), [#allocation6], 4294964224  ;;  %p360_p13 = scmp.lt.s32.totalorder %s2302_s13, 1  ;;  %v381_v16 = vld [vmem:[%s2837_s1] sm:$0xff]  ;;  %v382_v18 = vld [vmem:[%s2837_s1 + $0x8] sm:$0xff]  ;;  %vm485_vm0 = vcmask 130048  }
  0x1c   : > { %v1861_v17 = vld [vmem:[%s2837_s1 + $0x40] sm:$0xff]  ;;  %v1862_v19 = vld [vmem:[%s2837_s1 + $0x48] sm:$0xff]  ;;  %v383_v20 = vld [vmem:[%s2837_s1 + $0x10] sm:$0xff]  ;;  %vm814_vm1 = vcmask 523264   ;;  %vm1459_vm2 = vcmask 261120  }
  0x1d   : > { %s361_s23 = scalar_select %p360_p13, %s2302_s13, 1  ;;  %v1863_v21 = vld [vmem:[%s2837_s1 + $0x50] sm:$0xff]  ;;  %v384_v22 = vld [vmem:[%s2837_s1 + $0x18] sm:$0xff]  ;;  %v431_v25 = vld [vmem:[%s2838_s2 + $0x8] sm:$0xff] }
  0x1e   : > { %v1864_v23 = vld [vmem:[%s2837_s1 + $0x58] sm:$0xff]  ;;  %2022 = vmatpush.msra.mxu3 %v431_v25  ;;  %v385_v26 = vld [vmem:[%s2837_s1 + $0x20] sm:$0xff]  ;;  %v386_v28 = vld [vmem:[%s2837_s1 + $0x28] sm:$0xff] }
  0x1f   : > { %s2018_s24 = sshll.u32 %s361_s23, 7  ;;  %v1870_v24 = vld [vmem:[%s2838_s2 + $0x18] sm:$0xff]  ;;  %v1865_v27 = vld [vmem:[%s2837_s1 + $0x60] sm:$0xff]  ;;  %v1866_v29 = vld [vmem:[%s2837_s1 + $0x68] sm:$0xff] }
  0x20   : > { %s2359_s26 = scalar_lea.vmem %s2836_s0, %s2018_s24  ;;  %2020 = vmatpush.msra.mxu2 %v1870_v24  ;;  %v387_v30 = vld [vmem:[%s2837_s1 + $0x30] sm:$0xff]  ;;  %v388_v32 = vld [vmem:[%s2837_s1 + $0x38] sm:$0xff]  ;;  %v430_v35 = vld [vmem:[%s2838_s2] sm:$0xff]  ;;  %s357_s24 = sand.u32 1, %s2214_s10  }
  0x21   : > { %v2362_v0 = vld [vmem:[%s2359_s26 + $0x78] sm:$0xff]  ;;  %v2365_v1 = vld [vmem:[%s2359_s26 + $0x70] sm:$0xff]  ;;  %v2370_v2 = vld [vmem:[%s2359_s26 + $0x68] sm:$0xff]  ;;  %2023 = vmatpush.msra.mxu3 %v430_v35  ;;  %s1858_s25 = sshll.u32 %s357_s24, 6 }
  0x22   : > { %389 = vmatpush.msra.mxu0 %v2362_v0  ;;  %441 = vmatpush.msra.mxu1 %v2362_v0  ;;  %v2375_v3 = vld [vmem:[%s2359_s26 + $0x60] sm:$0xff]  ;;  %v2380_v4 = vld [vmem:[%s2359_s26 + $0x58] sm:$0xff]  ;;  %v2385_v5 = vld [vmem:[%s2359_s26 + $0x50] sm:$0xff]  ;;  %s2784_s21 = scalar_lea.vmem [#allocation7], %s1858_s25 }
  0x23   : > { %v2390_v6 = vld [vmem:[%s2359_s26 + $0x48] sm:$0xff]  ;;  %v2395_v7 = vld [vmem:[%s2359_s26 + $0x40] sm:$0xff]  ;;  %v2400_v8 = vld [vmem:[%s2359_s26 + $0x38] sm:$0xff]  ;;  %s1763_s14 = sshll.u32 %s2784_s21, 4  ;;  %s1764_s14 = int_to_ptr.vmem [resolvable:$true] %s1763_s14 }
  0x24   : > { %390 = vmatpush.msra.mxu0 %v2365_v1  ;;  %442 = vmatpush.msra.mxu1 %v2365_v1  ;;  %v2405_v9 = vld [vmem:[%s2359_s26 + $0x30] sm:$0xff]  ;;  %v2410_v10 = vld [vmem:[%s2359_s26 + $0x28] sm:$0xff]  ;;  %v2415_v11 = vld [vmem:[%s2359_s26 + $0x20] sm:$0xff] }
  0x25   : > { %v2420_v12 = vld [vmem:[%s2359_s26 + $0x18] sm:$0xff]  ;;  %v2425_v13 = vld [vmem:[%s2359_s26 + $0x10] sm:$0xff]  ;;  %v2430_v14 = vld [vmem:[%s2359_s26 + $0x8] sm:$0xff] }
  0x26   : > { %391 = vmatpush.msra.mxu0 %v2370_v2  ;;  %443 = vmatpush.msra.mxu1 %v2370_v2  ;;  %v2435_v15 = vld [vmem:[%s2359_s26] sm:$0xff]  ;;  %v1867_v31 = vld [vmem:[%s2837_s1 + $0x70] sm:$0xff]  ;;  %v1868_v33 = vld [vmem:[%s2837_s1 + $0x78] sm:$0xff]  ;;  %s2019_s26 = sshll.u32 %s2302_s13, 6  ;;  %s1751_s13 = scalar_lea.sflag [#allocation4], %s357_s24 }
  0x27   : > { %v1869_v34 = vld [vmem:[%s2838_s2 + $0x10] sm:$0xff]  ;;  %v1887_v52 = vld [vmem:[%s2837_s1 + $0x80] sm:$0xff]  ;;  %v1888_v53 = vld [vmem:[%s2837_s1 + $0x88] sm:$0xff]  ;;  %s1762_s29 = scalar_lea.hbm %s2845_s9, %s2019_s26  ;;  %s2172_s26 = scalar_lea.hbm %s2845_s9, 128 }
  0x28   : > { %392 = vmatpush.msra.mxu0 %v2375_v3  ;;  %444 = vmatpush.msra.mxu1 %v2375_v3  ;;  %v1889_v54 = vld [vmem:[%s2837_s1 + $0x90] sm:$0xff]  ;;  %v1890_v55 = vld [vmem:[%s2837_s1 + $0x98] sm:$0xff]  ;;  %v1891_v56 = vld [vmem:[%s2837_s1 + $0xa0] sm:$0xff]  ;;  %s1765_s16 = sshll.u32 %s1762_s29, 4  ;;  %s1766_s16 = int_to_ptr.hbm [resolvable:$true] %s1765_s16 }
  0x29   : > { %2021 = vmatpush.msra.mxu2 %v1869_v34  ;;  %v1892_v57 = vld [vmem:[%s2837_s1 + $0xa8] sm:$0xff]  ;;  %v1893_v58 = vld [vmem:[%s2837_s1 + $0xb0] sm:$0xff]  ;;  %v1894_v59 = vld [vmem:[%s2837_s1 + $0xb8] sm:$0xff]  ;;  %s2166_s17 = sshra.s32 %s1766_s16, 4  ;;  %s2167_s17 = int_to_ptr.hbm [resolvable:$true] %s2166_s17 }
  0x2a   : > { %393 = vmatpush.msra.mxu0 %v2380_v4  ;;  %445 = vmatpush.msra.mxu1 %v2380_v4  ;;  %v1896_v62 = vld [vmem:[%s2838_s2 + $0x28] sm:$0xff]  ;;  %v1895_v63 = vld [vmem:[%s2838_s2 + $0x20] sm:$0xff]  ;;  %s2168_s22 = scalar_lea.hbm %s2167_s17, 64  ;;  %p2173_p3 = scmp.lt.s32.totalorder %s2167_s17, %s2845_s9 }
  0x2b   : > { %625 = vmatpush.msrb.mxu2 %v2362_v0  ;;  %707 = vmatpush.msrb.mxu3 %v1896_v62  ;;  %p2169_p0 = scmp.ne.s32.totalorder %s2167_s17, %s2168_s22  ;;  %p2174_p4 = scmp.lt.s32.totalorder %s2172_s26, %s2168_s22 }
  0x2c   : > { %394 = vmatpush.msra.mxu0 %v2385_v5  ;;  %446 = vmatpush.msra.mxu1 %v2385_v5 }
  0x2d   : > { %626 = vmatpush.msrb.mxu2 %v2365_v1  ;;  %708 = vmatpush.msrb.mxu3 %v1895_v63  ;;  %v747_v1 = vld [vmem:[%s2839_s3 + $0x28] sm:$0xff]  ;;  %p2170_p1 = pnand %p2169_p0, %p2319_p5  ;;  %p2175_p7 = por %p2174_p4, %p2173_p3 }
  0x2e   : > { %395 = vmatpush.msra.mxu0 %v2390_v6  ;;  %447 = vmatpush.msra.mxu1 %v2390_v6 }
  0x2f   : > { %627 = vmatpush.msrb.mxu2 %v2370_v2  ;;  %v2228_v2 = vmov 0   ;;  %p2171_p2 = pneg %p2170_p1 }
  0x30   : > { %396 = vmatpush.msra.mxu0 %v2395_v7  ;;  %448 = vmatpush.msra.mxu1 %v2395_v7 }
  0x31   : > { %628 = vmatpush.msrb.mxu2 %v2375_v3  ;;  %2090 = vset.pattern.permute.xlu1 %v2228_v2  ;;  %p2176_p8 = pnand %p2175_p7, %p2171_p2 }
  0x32   : > { %397 = vmatpush.msra.mxu0 %v2400_v8  ;;  %449 = vmatpush.msra.mxu1 %v2400_v8 }
  0x33   : > { %629 = vmatpush.msrb.mxu2 %v2380_v4  ;;  %2089 = vset.pattern.permute.xlu0 %v2228_v2  ;;  %v749_v4 = vld [vmem:[%s2839_s3 + $0x38] sm:$0xff] }
  0x34   : > { %398 = vmatpush.msra.mxu0 %v2405_v9  ;;  %450 = vmatpush.msra.mxu1 %v2405_v9 }
  0x35   : > { %630 = vmatpush.msrb.mxu2 %v2385_v5  ;;  %777 = vperm.xlu1 %2090, %v747_v1   ;;  %v746_v5 = vld [vmem:[%s2839_s3 + $0x20] sm:$0xff] }
  0x36   : > { %399 = vmatpush.msra.mxu0 %v2410_v10  ;;  %451 = vmatpush.msra.mxu1 %v2410_v10 }
  0x37   : > { %631 = vmatpush.msrb.mxu2 %v2390_v6  ;;  %2091 = vset.pattern.permute.xlu2 %v2228_v2 }
  0x38   : > { %400 = vmatpush.msra.mxu0 %v2415_v11  ;;  %452 = vmatpush.msra.mxu1 %v2415_v11 }
  0x39   : > { %632 = vmatpush.msrb.mxu2 %v2395_v7  ;;  %787 = vperm.xlu0 %2089, %v749_v4   ;;  %v748_v7 = vld [vmem:[%s2839_s3 + $0x30] sm:$0xff] }
  0x3a   : > { %401 = vmatpush.msra.mxu0 %v2420_v12  ;;  %453 = vmatpush.msra.mxu1 %v2420_v12 }
  0x3b   : > { %633 = vmatpush.msrb.mxu2 %v2400_v8  ;;  %v742_v8 = vld [vmem:[%s2839_s3] sm:$0xff] }
  0x3c   : > { %402 = vmatpush.msra.mxu0 %v2425_v13  ;;  %454 = vmatpush.msra.mxu1 %v2425_v13 }
  0x3d   : > { %634 = vmatpush.msrb.mxu2 %v2405_v9  ;;  %772 = vperm.xlu1 %2090, %v746_v5  }
  0x3e   : > { %403 = vmatpush.msra.mxu0 %v2430_v14  ;;  %455 = vmatpush.msra.mxu1 %v2430_v14 }
  0x3f   : > { %635 = vmatpush.msrb.mxu2 %v2410_v10  ;;  %v743_v10 = vld [vmem:[%s2839_s3 + $0x8] sm:$0xff] }
  0x40   : > { %404 = vmatpush.msra.mxu0 %v2435_v15  ;;  %456 = vmatpush.msra.mxu1 %v2435_v15 }
  0x41   : > { %405 = vmatmul.f32.vlgmr.msra.gmra.mxu0 %v381_v16  ;;  %457 = vmatmul.f32.vlgmr.msra.gmra.mxu1 %v1861_v17  ;;  %v744_v17 = vld [vmem:[%s2839_s3 + $0x10] sm:$0xff] }
  0x42   : > { %524 = vmatpush.msrb.mxu0 %v1870_v24  ;;  %589 = vmatpush.msrb.mxu1 %v431_v25  ;;  %v1243_v24 = vld [vmem:[%s2842_s6 + $0x20] sm:$0xff] }
  0x43   : > { %636 = vmatpush.msrb.mxu2 %v2415_v11  ;;  %782 = vperm.xlu0 %2089, %v748_v7  }
  0x44   : > { %525 = vmatpush.msrb.mxu0 %v1869_v34  ;;  %590 = vmatpush.msrb.mxu1 %v430_v35 }
  0x45   : > { %637 = vmatpush.msrb.mxu2 %v2420_v12  ;;  %752 = vperm.xlu1 %2090, %v742_v8  }
  0x47   : > { %638 = vmatpush.msrb.mxu2 %v2425_v13 }
  0x49   : > { %408 = vmatmul.f32.gmra.mxu0 %v382_v18  ;;  %460 = vmatmul.f32.gmra.mxu1 %v1862_v19  ;;  %v1242_v18 = vld [vmem:[%s2842_s6 + $0x18] sm:$0xff]  ;;  %v1244_v19 = vld [vmem:[%s2842_s6 + $0x28] sm:$0xff] }
  0x4a   : > { %639 = vmatpush.msrb.mxu2 %v2430_v14  ;;  %v745_v14 = vld [vmem:[%s2839_s3 + $0x18] sm:$0xff] }
  0x4b   : > { %757 = vperm.xlu0 %2089, %v743_v10   ;;  %767 = vperm.xlu2 %2091, %v745_v14  }
  0x4c   : > { %640 = vmatpush.msrb.mxu2 %v2435_v15  ;;  %v1245_v15 = vld [vmem:[%s2842_s6 + $0x30] sm:$0xff] }
  0x4d   : > { %1274 = vperm.xlu1 %2090, %v1244_v19  }
  0x51   : > { %411 = vmatmul.f32.gmra.mxu0 %v383_v20  ;;  %463 = vmatmul.f32.gmra.mxu1 %v1863_v21  ;;  %v1239_v20 = vld [vmem:[%s2842_s6] sm:$0xff]  ;;  %v1246_v21 = vld [vmem:[%s2842_s6 + $0x38] sm:$0xff] }
  0x53   : > { %1279 = vperm.xlu0 %2089, %v1245_v15   ;;  %762 = vperm.xlu2 %2091, %v744_v17  }
  0x59   : > { %414 = vmatmul.f32.gmra.mxu0 %v384_v22  ;;  %466 = vmatmul.f32.gmra.mxu1 %v1864_v23  ;;  %v1241_v23 = vld [vmem:[%s2842_s6 + $0x10] sm:$0xff] }
  0x5a   : > { %1259 = vperm.xlu1 %2090, %v1241_v23   ;;  %v806_v23 = vld [vmem:[#allocation2] sm:$0xff] }
  0x5b   : > { %1264 = vperm.xlu0 %2089, %v1242_v18   ;;  %1284 = vperm.xlu2 %2091, %v1246_v21  }
  0x61   : > { %417 = vmatmul.f32.gmra.mxu0 %v385_v26  ;;  %469 = vmatmul.f32.gmra.mxu1 %v1865_v27  ;;  %v1240_v26 = vld [vmem:[%s2842_s6 + $0x8] sm:$0xff] }
  0x63   : > { %1249 = vperm.xlu0 %2089, %v1239_v20   ;;  %1269 = vperm.xlu2 %2091, %v1243_v24   ;;  %v883_v24 = vld [vmem:[#allocation2 + $0x40] sm:$0xff] }
  0x69   : > { %420 = vmatmul.f32.gmra.mxu0 %v386_v28  ;;  %472 = vmatmul.f32.gmra.mxu1 %v1866_v29 }
  0x6b   : > { %1254 = vperm.xlu2 %2091, %v1240_v26   ;;  %v884_v26 = vld [vmem:[#allocation2 + $0x48] sm:$0xff] }
  0x71   : > { %423 = vmatmul.f32.gmra.mxu0 %v387_v30  ;;  %475 = vmatmul.f32.gmra.mxu1 %v1867_v31 }
  0x79   : > { %426 = vmatmul.f32.gmra.mxu0 %v388_v32  ;;  %478 = vmatmul.f32.gmra.mxu1 %v1868_v33 }
  0xbe   : > { %v406_v36 = vpop.f32.mrf.mxu0  ;;  %v458_v37 = vpop.f32.mrf.mxu1 }
  0xbf   : > { %1871 = vmatmul.msk.f32.vlgmr.msrb.gmra.mxu0 %vm485_vm0, %v458_v37  ;;  %1879 = vmatmul.msk.f32.vlgmr.msrb.gmra.mxu1 %vm485_vm0, %v406_v36 }
  0xc6   : > { %v409_v38 = vpop.f32.mrf.mxu0  ;;  %v461_v39 = vpop.f32.mrf.mxu1 }
  0xc7   : > { %1872 = vmatmul.msk.f32.gmra.mxu0 %vm485_vm0, %v461_v39  ;;  %1880 = vmatmul.msk.f32.gmra.mxu1 %vm485_vm0, %v409_v38 }
  0xce   : > { %v412_v40 = vpop.f32.mrf.mxu0  ;;  %v464_v41 = vpop.f32.mrf.mxu1 }
  0xcf   : > { %1873 = vmatmul.msk.f32.vlgmr.msra.gmra.mxu2 %vm485_vm0, %v464_v41  ;;  %1881 = vmatmul.msk.f32.vlgmr.msra.gmra.mxu3 %vm485_vm0, %v412_v40  ;;  %v788_v41 = vpop.permute.xlu0 %787 }
  0xd6   : > { %v415_v42 = vpop.f32.mrf.mxu0  ;;  %v467_v43 = vpop.f32.mrf.mxu1 }
  0xd7   : > { %1874 = vmatmul.msk.f32.gmra.mxu2 %vm485_vm0, %v467_v43  ;;  %1882 = vmatmul.msk.f32.gmra.mxu3 %vm485_vm0, %v415_v42  ;;  %v778_v42 = vpop.permute.xlu1 %777 }
  0xde   : > { %v418_v44 = vpop.f32.mrf.mxu0  ;;  %v470_v45 = vpop.f32.mrf.mxu1 }
  0xdf   : > { %1875 = vmatmul.msk.f32.gmra.mxu2 %vm485_vm0, %v470_v45  ;;  %1883 = vmatmul.msk.f32.gmra.mxu3 %vm485_vm0, %v418_v44 }
  0xe6   : > { %v421_v46 = vpop.f32.mrf.mxu0  ;;  %v473_v47 = vpop.f32.mrf.mxu1 }
  0xe7   : > { %1876 = vmatmul.msk.f32.gmra.mxu2 %vm485_vm0, %v473_v47  ;;  %1884 = vmatmul.msk.f32.gmra.mxu3 %vm485_vm0, %v421_v46  ;;  %v768_v47 = vpop.permute.xlu2 %767 }
  0xee   : > { %v424_v48 = vpop.f32.mrf.mxu0  ;;  %v476_v49 = vpop.f32.mrf.mxu1 }
  0xef   : > { %1877 = vmatmul.msk.f32.gmra.mxu2 %vm485_vm0, %v476_v49  ;;  %1885 = vmatmul.msk.f32.gmra.mxu3 %vm485_vm0, %v424_v48 }
  0xf6   : > { %v427_v50 = vpop.f32.mrf.mxu0  ;;  %v479_v51 = vpop.f32.mrf.mxu1 }
  0xf7   : > { %1878 = vmatmul.msk.f32.gmra.mxu2 %vm485_vm0, %v479_v51  ;;  %1886 = vmatmul.msk.f32.gmra.mxu3 %vm485_vm0, %v427_v50  ;;  %v783_v51 = vpop.permute.xlu0 %782 }
  0xff   : > { %641 = vmatmul.f32.vlgmr.msrb.gmra.mxu2 %v1887_v52 }
 0x107   : > { %644 = vmatmul.f32.gmra.mxu2 %v1888_v53 }
 0x10f   : > { %647 = vmatmul.f32.gmra.mxu2 %v1889_v54 }
 0x117   : > { %650 = vmatmul.f32.gmra.mxu2 %v1890_v55 }
 0x11f   : > { %653 = vmatmul.f32.gmra.mxu2 %v1891_v56  ;;  %v773_v56 = vpop.permute.xlu1 %772 }
 0x127   : > { %656 = vmatmul.f32.gmra.mxu2 %v1892_v57 }
 0x12f   : > { %659 = vmatmul.f32.gmra.mxu2 %v1893_v58 }
 0x137   : > { %662 = vmatmul.f32.gmra.mxu2 %v1894_v59 }
 0x13c   : > { %v527_v44 = vpop.f32.mrf.mxu0  ;;  %v592_v45 = vpop.f32.mrf.mxu1 }
 0x13d   : > { %v593_v10 = vadd.f32 %v592_v45, %v527_v44  ;;  %v881_v44 = vld [vmem:[%s2841_s5 + $0x8] sm:$0xff]  ;;  %v1094_v45 = vld [vmem:[#allocation2 + $0xa0] sm:$0xff] }
 0x13e   : > { %1062 = vmatpush.msra.mxu3 %v881_v44 }
 0x144   : > { %v530_v63 = vpop.f32.mrf.mxu0  ;;  %v595_v1 = vpop.f32.mrf.mxu1 }
 0x152   : > { %v2557_v60 = vpop.f32.mrf.mxu2  ;;  %v598_v29 = vpop.f32.mrf.mxu3 }
 0x153   : > { %v599_v2 = vadd.f32 %v598_v29, %v2557_v60  ;;  %v809_v29 = vld [vmem:[#allocation2 + $0x18] sm:$0xff] }
 0x15a   : > { %v2559_v61 = vpop.f32.mrf.mxu2  ;;  %v601_v30 = vpop.f32.mrf.mxu3 }
 0x15b   : > { %v602_v57 = vadd.f32 %v601_v30, %v2559_v61  ;;  %v886_v30 = vld [vmem:[#allocation2 + $0x58] sm:$0xff] }
 0x162   : > { %v2567_v0 = vpop.f32.mrf.mxu2  ;;  %v604_v31 = vpop.f32.mrf.mxu3 }
 0x163   : > { %v605_v53 = vadd.f32 %v604_v31, %v2567_v0  ;;  %v810_v31 = vld [vmem:[#allocation2 + $0x20] sm:$0xff] }
 0x16a   : > { %v2572_v3 = vpop.f32.mrf.mxu2  ;;  %v607_v32 = vpop.f32.mrf.mxu3 }
 0x16b   : > { %v608_v48 = vadd.f32 %v607_v32, %v2572_v3  ;;  %v887_v32 = vld [vmem:[#allocation2 + $0x60] sm:$0xff] }
 0x172   : > { %v545_v6 = vpop.f32.mrf.mxu2  ;;  %v610_v33 = vpop.f32.mrf.mxu3 }
 0x173   : > { %v611_v46 = vadd.f32 %v610_v33, %v545_v6  ;;  %v596_v6 = vadd.f32 %v595_v1, %v530_v63  ;;  %v811_v33 = vld [vmem:[#allocation2 + $0x28] sm:$0xff]  ;;  %v1947_v1 = vld [vmem:[%s2841_s5 + $0x20] sm:$0xff] }
 0x17a   : > { %v548_v9 = vpop.f32.mrf.mxu2  ;;  %v613_v34 = vpop.f32.mrf.mxu3 }
 0x17b   : > { %v614_v49 = vadd.f32 %v613_v34, %v548_v9  ;;  %v763_v9 = vpop.permute.xlu2 %762  ;;  %v888_v34 = vld [vmem:[#allocation2 + $0x68] sm:$0xff] }
 0x182   : > { %v642_v11 = vpop.f32.mrf.mxu2 }
 0x183   : > { %1897 = vmatmul.msk.f32.vlgmr.msrb.gmra.mxu3 %vm485_vm0, %v642_v11 }
 0x18a   : > { %v645_v12 = vpop.f32.mrf.mxu2 }
 0x18b   : > { %1898 = vmatmul.msk.f32.gmra.mxu3 %vm485_vm0, %v645_v12 }
 0x192   : > { %v648_v13 = vpop.f32.mrf.mxu2 }
 0x193   : > { %1899 = vmatmul.msk.f32.gmra.mxu3 %vm485_vm0, %v648_v13  ;;  %v758_v13 = vpop.permute.xlu0 %757 }
 0x19a   : > { %v651_v16 = vpop.f32.mrf.mxu2 }
 0x19b   : > { %1900 = vmatmul.msk.f32.gmra.mxu3 %vm485_vm0, %v651_v16  ;;  %v753_v16 = vpop.permute.xlu1 %752 }
 0x1a2   : > { %v654_v22 = vpop.f32.mrf.mxu2 }
 0x1a3   : > { %1901 = vmatmul.msk.f32.gmra.mxu3 %vm485_vm0, %v654_v22  ;;  %v1275_v44 = vpop.permute.xlu1 %1274 }
 0x1aa   : > { %v657_v25 = vpop.f32.mrf.mxu2 }
 0x1ab   : > { %1902 = vmatmul.msk.f32.gmra.mxu3 %vm485_vm0, %v657_v25  ;;  %v807_v25 = vld [vmem:[#allocation2 + $0x8] sm:$0xff] }
 0x1b2   : > { %v660_v27 = vpop.f32.mrf.mxu2 }
 0x1b3   : > { %1903 = vmatmul.msk.f32.gmra.mxu3 %vm485_vm0, %v660_v27  ;;  %v808_v27 = vld [vmem:[#allocation2 + $0x10] sm:$0xff] }
 0x1ba   : > { %v663_v28 = vpop.f32.mrf.mxu2 }
 0x1bb   : > { %1904 = vmatmul.msk.f32.gmra.mxu3 %vm485_vm0, %v663_v28  ;;  %v885_v28 = vld [vmem:[#allocation2 + $0x50] sm:$0xff] }
 0x206   : > { %v710_v35 = vpop.f32.mrf.mxu3 }
 0x207   : > { %v734_v14 = vadd.f32 %v710_v35, %v593_v10  ;;  %v812_v35 = vld [vmem:[#allocation2 + $0x30] sm:$0xff] }
 0x209   : > { %v790_v19 = vadd.f32 %v753_v16, %v734_v14 }
 0x20b   : > { %v798_v22 = vmax.f32 %v790_v19, 0.0 }
 0x20e   : > { %v713_v36 = vpop.f32.mrf.mxu3 }
 0x20f   : > { %v735_v11 = vadd.f32 %v713_v36, %v596_v6  ;;  %v889_v36 = vld [vmem:[#allocation2 + $0x70] sm:$0xff] }
 0x211   : > { %v791_v17 = vadd.f32 %v758_v13, %v735_v11 }
 0x213   : > { %v799_v21 = vmax.f32 %v791_v17, 0.0 }
 0x216   : > { %v716_v37 = vpop.f32.mrf.mxu3 }
 0x217   : > { %v736_v7 = vadd.f32 %v716_v37, %v599_v2  ;;  %v813_v37 = vld [vmem:[#allocation2 + $0x38] sm:$0xff] }
 0x219   : > { %v792_v15 = vadd.f32 %v763_v9, %v736_v7 }
 0x21b   : > { %v800_v20 = vmax.f32 %v792_v15, 0.0 }
 0x21e   : > { %v719_v38 = vpop.f32.mrf.mxu3 }
 0x21f   : > { %v737_v4 = vadd.f32 %v719_v38, %v602_v57  ;;  %v890_v38 = vld [vmem:[#allocation2 + $0x78] sm:$0xff]  ;;  %v1948_v57 = vld [vmem:[%s2841_s5 + $0x28] sm:$0xff] }
 0x221   : > { %v793_v61 = vadd.f32 %v768_v47, %v737_v4  ;;  %v880_v47 = vld [vmem:[%s2841_s5] sm:$0xff] }
 0x222   : > { %1063 = vmatpush.msra.mxu3 %v880_v47 }
 0x223   : > { %v801_v18 = vmax.f32 %v793_v61, 0.0 }
 0x226   : > { %v722_v39 = vpop.f32.mrf.mxu3 }
 0x227   : > { %v738_v58 = vadd.f32 %v722_v39, %v605_v53  ;;  %v1090_v39 = vld [vmem:[#allocation2 + $0x80] sm:$0xff] }
 0x229   : > { %v794_v8 = vadd.f32 %v773_v56, %v738_v58 }
 0x22b   : > { %v802_v60 = vmax.f32 %v794_v8, 0.0 }
 0x22e   : > { %v725_v40 = vpop.f32.mrf.mxu3 }
 0x22f   : > { %v739_v54 = vadd.f32 %v725_v40, %v608_v48  ;;  %v1091_v40 = vld [vmem:[#allocation2 + $0x88] sm:$0xff] }
 0x230   : > { %v1095_v48 = vld [vmem:[#allocation2 + $0xa8] sm:$0xff] }
 0x231   : > { %v795_v3 = vadd.f32 %v778_v42, %v739_v54  ;;  %v1093_v42 = vld [vmem:[#allocation2 + $0x98] sm:$0xff] }
 0x233   : > { %v803_v12 = vmax.f32 %v795_v3, 0.0 }
 0x236   : > { %v728_v43 = vpop.f32.mrf.mxu3 }
 0x237   : > { %v740_v50 = vadd.f32 %v728_v43, %v611_v46  ;;  %v1922_v43 = vld [vmem:[%s2841_s5 + $0x18] sm:$0xff]  ;;  %v1921_v46 = vld [vmem:[%s2841_s5 + $0x10] sm:$0xff] }
 0x238   : > { %997 = vmatpush.msra.mxu2 %v1922_v43 }
 0x239   : > { %v796_v59 = vadd.f32 %v783_v51, %v740_v50  ;;  %v1097_v50 = vld [vmem:[#allocation2 + $0xb8] sm:$0xff] }
 0x23a   : > { %998 = vmatpush.msra.mxu2 %v1921_v46 }
 0x23b   : > { %v804_v0 = vmax.f32 %v796_v59, 0.0 }
 0x23e   : > { %v731_v52 = vpop.f32.mrf.mxu3 }
 0x23f   : > { %v741_v55 = vadd.f32 %v731_v52, %v614_v49  ;;  %v1096_v49 = vld [vmem:[#allocation2 + $0xb0] sm:$0xff] }
 0x241   : > { %v797_v62 = vadd.f32 %v788_v41, %v741_v55  ;;  %v1092_v41 = vld [vmem:[#allocation2 + $0x90] sm:$0xff] }
 0x243   : > { %v805_v5 = vmax.f32 %v797_v62, 0.0 }
 0x245   : > { %847 = vmatpush.msra.mxu0 %v805_v5  ;;  %923 = vmatpush.msra.mxu1 %v805_v5 }
 0x247   : > { %848 = vmatpush.msra.mxu0 %v804_v0  ;;  %924 = vmatpush.msra.mxu1 %v804_v0 }
 0x249   : > { %849 = vmatpush.msra.mxu0 %v803_v12  ;;  %925 = vmatpush.msra.mxu1 %v803_v12 }
 0x24b   : > { %850 = vmatpush.msra.mxu0 %v802_v60  ;;  %926 = vmatpush.msra.mxu1 %v802_v60 }
 0x24d   : > { %851 = vmatpush.msra.mxu0 %v801_v18  ;;  %927 = vmatpush.msra.mxu1 %v801_v18 }
 0x24f   : > { %852 = vmatpush.msra.mxu0 %v800_v20  ;;  %928 = vmatpush.msra.mxu1 %v800_v20 }
 0x251   : > { %853 = vmatpush.msra.mxu0 %v799_v21  ;;  %929 = vmatpush.msra.mxu1 %v799_v21 }
 0x253   : > { %854 = vmatpush.msra.mxu0 %v798_v22  ;;  %930 = vmatpush.msra.mxu1 %v798_v22 }
 0x254   : > { %1905 = vmatmul.msk.f32.vlgmr.msra.gmra.mxu0 %vm814_vm1, %v806_v23  ;;  %1913 = vmatmul.msk.f32.vlgmr.msra.gmra.mxu1 %vm814_vm1, %v883_v24 }
 0x255   : > { %1130 = vmatpush.msrb.mxu0 %v805_v5  ;;  %1204 = vmatpush.msrb.mxu1 %v1948_v57 }
 0x257   : > { %1131 = vmatpush.msrb.mxu0 %v804_v0  ;;  %1205 = vmatpush.msrb.mxu1 %v1947_v1 }
 0x259   : > { %1132 = vmatpush.msrb.mxu0 %v803_v12 }
 0x25b   : > { %1133 = vmatpush.msrb.mxu0 %v802_v60 }
 0x25c   : > { %1906 = vmatmul.msk.f32.gmra.mxu0 %vm814_vm1, %v807_v25  ;;  %1914 = vmatmul.msk.f32.gmra.mxu1 %vm814_vm1, %v884_v26 }
 0x25d   : > { %1134 = vmatpush.msrb.mxu0 %v801_v18 }
 0x25f   : > { %1135 = vmatpush.msrb.mxu0 %v800_v20 }
 0x261   : > { %1136 = vmatpush.msrb.mxu0 %v799_v21 }
 0x263   : > { %1137 = vmatpush.msrb.mxu0 %v798_v22 }
 0x264   : > { %1907 = vmatmul.msk.f32.gmra.mxu0 %vm814_vm1, %v808_v27  ;;  %1915 = vmatmul.msk.f32.gmra.mxu1 %vm814_vm1, %v885_v28 }
 0x26c   : > { %1908 = vmatmul.msk.f32.gmra.mxu0 %vm814_vm1, %v809_v29  ;;  %1916 = vmatmul.msk.f32.gmra.mxu1 %vm814_vm1, %v886_v30 }
 0x274   : > { %1909 = vmatmul.msk.f32.gmra.mxu0 %vm814_vm1, %v810_v31  ;;  %1917 = vmatmul.msk.f32.gmra.mxu1 %vm814_vm1, %v887_v32 }
 0x27c   : > { %1910 = vmatmul.msk.f32.gmra.mxu0 %vm814_vm1, %v811_v33  ;;  %1918 = vmatmul.msk.f32.gmra.mxu1 %vm814_vm1, %v888_v34 }
 0x284   : > { %1911 = vmatmul.msk.f32.gmra.mxu0 %vm814_vm1, %v812_v35  ;;  %1919 = vmatmul.msk.f32.gmra.mxu1 %vm814_vm1, %v889_v36  ;;  %v1285_v35 = vpop.permute.xlu2 %1284 }
 0x28c   : > { %1912 = vmatmul.msk.f32.gmra.mxu0 %vm814_vm1, %v813_v37  ;;  %1920 = vmatmul.msk.f32.gmra.mxu1 %vm814_vm1, %v890_v38  ;;  %v1280_v37 = vpop.permute.xlu0 %1279 }
 0x294   : > { %1939 = vmatmul.msk.f32.vlgmr.msrb.gmra.mxu0 %vm814_vm1, %v1090_v39 }
 0x29c   : > { %1940 = vmatmul.msk.f32.gmra.mxu0 %vm814_vm1, %v1091_v40 }
 0x2a4   : > { %1941 = vmatmul.msk.f32.gmra.mxu0 %vm814_vm1, %v1092_v41 }
 0x2ac   : > { %1942 = vmatmul.msk.f32.gmra.mxu0 %vm814_vm1, %v1093_v42 }
 0x2b4   : > { %1943 = vmatmul.msk.f32.gmra.mxu0 %vm814_vm1, %v1094_v45 }
 0x2bc   : > { %1944 = vmatmul.msk.f32.gmra.mxu0 %vm814_vm1, %v1095_v48 }
 0x2c4   : > { %1945 = vmatmul.msk.f32.gmra.mxu0 %vm814_vm1, %v1096_v49  ;;  %v1270_v49 = vpop.permute.xlu2 %1269 }
 0x2cc   : > { %1946 = vmatmul.msk.f32.gmra.mxu0 %vm814_vm1, %v1097_v50 }
 0x2d1   : > { %v856_v51 = vpop.f32.mrf.mxu0  ;;  %v932_v52 = vpop.f32.mrf.mxu1 }
 0x2d2   : > { %1923 = vmatmul.msk.f32.vlgmr.msra.gmra.mxu2 %vm485_vm0, %v932_v52  ;;  %1931 = vmatmul.msk.f32.vlgmr.msra.gmra.mxu3 %vm485_vm0, %v856_v51 }
 0x2d9   : > { %v859_v53 = vpop.f32.mrf.mxu0  ;;  %v935_v54 = vpop.f32.mrf.mxu1 }
 0x2da   : > { %1924 = vmatmul.msk.f32.gmra.mxu2 %vm485_vm0, %v935_v54  ;;  %1932 = vmatmul.msk.f32.gmra.mxu3 %vm485_vm0, %v859_v53  ;;  %v1265_v54 = vpop.permute.xlu0 %1264 }
 0x2e1   : > { %v862_v55 = vpop.f32.mrf.mxu0  ;;  %v938_v56 = vpop.f32.mrf.mxu1 }
 0x2e2   : > { %1925 = vmatmul.msk.f32.gmra.mxu2 %vm485_vm0, %v938_v56  ;;  %1933 = vmatmul.msk.f32.gmra.mxu3 %vm485_vm0, %v862_v55 }
 0x2e9   : > { %v865_v58 = vpop.f32.mrf.mxu0  ;;  %v941_v59 = vpop.f32.mrf.mxu1 }
 0x2ea   : > { %1926 = vmatmul.msk.f32.gmra.mxu2 %vm485_vm0, %v941_v59  ;;  %1934 = vmatmul.msk.f32.gmra.mxu3 %vm485_vm0, %v865_v58 }
 0x2f1   : > { %v868_v62 = vpop.f32.mrf.mxu0  ;;  %v944_v63 = vpop.f32.mrf.mxu1 }
 0x2f2   : > { %1927 = vmatmul.msk.f32.gmra.mxu2 %vm485_vm0, %v944_v63  ;;  %1935 = vmatmul.msk.f32.gmra.mxu3 %vm485_vm0, %v868_v62 }
 0x2f9   : > { %v871_v2 = vpop.f32.mrf.mxu0  ;;  %v947_v4 = vpop.f32.mrf.mxu1 }
 0x2fa   : > { %1928 = vmatmul.msk.f32.gmra.mxu2 %vm485_vm0, %v947_v4  ;;  %1936 = vmatmul.msk.f32.gmra.mxu3 %vm485_vm0, %v871_v2 }
 0x301   : > { %v874_v3 = vpop.f32.mrf.mxu0  ;;  %v950_v5 = vpop.f32.mrf.mxu1 }
 0x302   : > { %1929 = vmatmul.msk.f32.gmra.mxu2 %vm485_vm0, %v950_v5  ;;  %1937 = vmatmul.msk.f32.gmra.mxu3 %vm485_vm0, %v874_v3  ;;  %v1260_v5 = vpop.permute.xlu1 %1259 }
 0x309   : > { %v877_v6 = vpop.f32.mrf.mxu0  ;;  %v953_v7 = vpop.f32.mrf.mxu1 }
 0x30a   : > { %1930 = vmatmul.msk.f32.gmra.mxu2 %vm485_vm0, %v953_v7  ;;  %1938 = vmatmul.msk.f32.gmra.mxu3 %vm485_vm0, %v877_v6 }
 0x311   : > { %v1139_v8 = vpop.f32.mrf.mxu0 }
 0x312   : > { %1949 = vmatmul.msk.f32.vlgmr.msrb.gmra.mxu1 %vm485_vm0, %v1139_v8  ;;  %v1255_v8 = vpop.permute.xlu2 %1254 }
 0x319   : > { %v1142_v0 = vpop.f32.mrf.mxu0 }
 0x31a   : > { %1950 = vmatmul.msk.f32.gmra.mxu1 %vm485_vm0, %v1142_v0 }
 0x321   : > { %v1145_v9 = vpop.f32.mrf.mxu0 }
 0x322   : > { %1951 = vmatmul.msk.f32.gmra.mxu1 %vm485_vm0, %v1145_v9 }
 0x329   : > { %v1148_v10 = vpop.f32.mrf.mxu0 }
 0x32a   : > { %1952 = vmatmul.msk.f32.gmra.mxu1 %vm485_vm0, %v1148_v10  ;;  %v1250_v10 = vpop.permute.xlu0 %1249 }
 0x331   : > { %v1151_v11 = vpop.f32.mrf.mxu0 }
 0x332   : > { %1953 = vmatmul.msk.f32.gmra.mxu1 %vm485_vm0, %v1151_v11 }
 0x339   : > { %v1154_v61 = vpop.f32.mrf.mxu0 }
 0x33a   : > { %1954 = vmatmul.msk.f32.gmra.mxu1 %vm485_vm0, %v1154_v61 }
 0x341   : > { %v1157_v12 = vpop.f32.mrf.mxu0 }
 0x342   : > { %1955 = vmatmul.msk.f32.gmra.mxu1 %vm485_vm0, %v1157_v12 }
 0x349   : > { %v1160_v13 = vpop.f32.mrf.mxu0 }
 0x34a   : > { %1956 = vmatmul.msk.f32.gmra.mxu1 %vm485_vm0, %v1160_v13 }
 0x355   : > { %v1000_v14 = vpop.f32.mrf.mxu2  ;;  %v1065_v15 = vpop.f32.mrf.mxu3 }
 0x356   : > { %v1066_v60 = vadd.f32 %v1065_v15, %v1000_v14  ;;  %v1303_v14 = vld [vmem:[#allocation5] sm:$0xff] }
 0x357   : > { %v1381_v15 = vld [vmem:[#allocation5 + $0x40] sm:$0xff] }
 0x35d   : > { %v1003_v16 = vpop.f32.mrf.mxu2  ;;  %v1068_v17 = vpop.f32.mrf.mxu3 }
 0x35e   : > { %v1069_v59 = vadd.f32 %v1068_v17, %v1003_v16  ;;  %v1382_v16 = vld [vmem:[#allocation5 + $0x48] sm:$0xff]  ;;  %v1305_v17 = vld [vmem:[#allocation5 + $0x10] sm:$0xff] }
 0x365   : > { %v1006_v19 = vpop.f32.mrf.mxu2  ;;  %v1071_v21 = vpop.f32.mrf.mxu3 }
 0x366   : > { %v1072_v55 = vadd.f32 %v1071_v21, %v1006_v19  ;;  %v1306_v19 = vld [vmem:[#allocation5 + $0x18] sm:$0xff]  ;;  %v1307_v21 = vld [vmem:[#allocation5 + $0x20] sm:$0xff] }
 0x36d   : > { %v1009_v23 = vpop.f32.mrf.mxu2  ;;  %v1074_v24 = vpop.f32.mrf.mxu3 }
 0x36e   : > { %v1075_v50 = vadd.f32 %v1074_v24, %v1009_v23  ;;  %v1308_v23 = vld [vmem:[#allocation5 + $0x28] sm:$0xff] }
 0x36f   : > { %v1386_v24 = vld [vmem:[#allocation5 + $0x68] sm:$0xff] }
 0x375   : > { %v1012_v26 = vpop.f32.mrf.mxu2  ;;  %v1077_v27 = vpop.f32.mrf.mxu3 }
 0x376   : > { %v1078_v46 = vadd.f32 %v1077_v27, %v1012_v26  ;;  %v1387_v26 = vld [vmem:[#allocation5 + $0x70] sm:$0xff]  ;;  %v1310_v27 = vld [vmem:[#allocation5 + $0x38] sm:$0xff] }
 0x37d   : > { %v1015_v29 = vpop.f32.mrf.mxu2  ;;  %v1080_v30 = vpop.f32.mrf.mxu3 }
 0x37e   : > { %v1081_v41 = vadd.f32 %v1080_v30, %v1015_v29  ;;  %v1591_v29 = vld [vmem:[#allocation5 + $0x80] sm:$0xff]  ;;  %v1592_v30 = vld [vmem:[#allocation5 + $0x88] sm:$0xff] }
 0x385   : > { %v1018_v33 = vpop.f32.mrf.mxu2  ;;  %v1083_v34 = vpop.f32.mrf.mxu3 }
 0x386   : > { %v1084_v40 = vadd.f32 %v1083_v34, %v1018_v33  ;;  %v1595_v33 = vld [vmem:[#allocation5 + $0xa0] sm:$0xff]  ;;  %v1976_v34 = vld [vmem:[%s2844_s8 + $0x38] sm:$0xff] }
 0x387   : > { %1496 = vmatpush.msra.mxu0 %v1976_v34 }
 0x38d   : > { %v1021_v38 = vpop.f32.mrf.mxu2  ;;  %v1086_v39 = vpop.f32.mrf.mxu3 }
 0x38e   : > { %v1087_v42 = vadd.f32 %v1086_v39, %v1021_v38  ;;  %v1974_v38 = vld [vmem:[%s2844_s8 + $0x28] sm:$0xff] }
 0x38f   : > { %v1207_v18 = vpop.f32.mrf.mxu1  ;;  %v1377_v39 = vld [vmem:[%s2844_s8 + $0x8] sm:$0xff] }
 0x390   : > { %v1231_v20 = vadd.f32 %v1207_v18, %v1066_v60  ;;  %v1304_v60 = vld [vmem:[#allocation5 + $0x8] sm:$0xff]  ;;  %v1383_v18 = vld [vmem:[#allocation5 + $0x50] sm:$0xff] }
 0x392   : > { %v1287_v11 = vadd.f32 %v1250_v10, %v1231_v20  ;;  %v1384_v20 = vld [vmem:[#allocation5 + $0x58] sm:$0xff] }
 0x394   : > { %v1295_v13 = vmax.f32 %v1287_v11, 0.0 }
 0x397   : > { %v1210_v22 = vpop.f32.mrf.mxu1 }
 0x398   : > { %v1232_v2 = vadd.f32 %v1210_v22, %v1069_v59  ;;  %v1385_v22 = vld [vmem:[#allocation5 + $0x60] sm:$0xff] }
 0x39a   : > { %v1288_v0 = vadd.f32 %v1255_v8, %v1232_v2 }
 0x39c   : > { %v1296_v12 = vmax.f32 %v1288_v0, 0.0 }
 0x39f   : > { %v1213_v25 = vpop.f32.mrf.mxu1 }
 0x3a0   : > { %v1233_v62 = vadd.f32 %v1213_v25, %v1072_v55  ;;  %v1309_v25 = vld [vmem:[#allocation5 + $0x30] sm:$0xff] }
 0x3a2   : > { %v1289_v6 = vadd.f32 %v1260_v5, %v1233_v62 }
 0x3a4   : > { %v1297_v61 = vmax.f32 %v1289_v6, 0.0 }
 0x3a7   : > { %v1216_v28 = vpop.f32.mrf.mxu1 }
 0x3a8   : > { %v1234_v56 = vadd.f32 %v1216_v28, %v1075_v50  ;;  %v1388_v28 = vld [vmem:[#allocation5 + $0x78] sm:$0xff] }
 0x3a9   : > { %v2004_v50 = vld [vmem:[%s2844_s8 + $0x58] sm:$0xff] }
 0x3aa   : > { %v1290_v4 = vadd.f32 %v1265_v54, %v1234_v56  ;;  %v2002_v54 = vld [vmem:[%s2844_s8 + $0x48] sm:$0xff] }
 0x3ac   : > { %v1298_v9 = vmax.f32 %v1290_v4, 0.0 }
 0x3af   : > { %v1219_v31 = vpop.f32.mrf.mxu1 }
 0x3b0   : > { %v1235_v51 = vadd.f32 %v1219_v31, %v1078_v46  ;;  %v1593_v31 = vld [vmem:[#allocation5 + $0x90] sm:$0xff] }
 0x3b2   : > { %v1291_v63 = vadd.f32 %v1270_v49, %v1235_v51 }
 0x3b4   : > { %v1299_v7 = vmax.f32 %v1291_v63, 0.0 }
 0x3b7   : > { %v1222_v32 = vpop.f32.mrf.mxu1 }
 0x3b8   : > { %v1236_v47 = vadd.f32 %v1222_v32, %v1081_v41  ;;  %v1594_v32 = vld [vmem:[#allocation5 + $0x98] sm:$0xff]  ;;  %v1376_v41 = vld [vmem:[%s2844_s8] sm:$0xff] }
 0x3ba   : > { %v1292_v57 = vadd.f32 %v1275_v44, %v1236_v47  ;;  %v1598_v44 = vld [vmem:[#allocation5 + $0xb8] sm:$0xff] }
 0x3bc   : > { %v1300_v3 = vmax.f32 %v1292_v57, 0.0  ;;  %v2001_v57 = vld [vmem:[%s2844_s8 + $0x40] sm:$0xff] }
 0x3bf   : > { %v1225_v36 = vpop.f32.mrf.mxu1 }
 0x3c0   : > { %v1237_v43 = vadd.f32 %v1225_v36, %v1084_v40  ;;  %v1975_v36 = vld [vmem:[%s2844_s8 + $0x30] sm:$0xff]  ;;  %v1973_v40 = vld [vmem:[%s2844_s8 + $0x20] sm:$0xff] }
 0x3c1   : > { %1497 = vmatpush.msra.mxu0 %v1975_v36 }
 0x3c2   : > { %v1293_v52 = vadd.f32 %v1280_v37, %v1237_v43  ;;  %v1378_v37 = vld [vmem:[%s2844_s8 + $0x10] sm:$0xff] }
 0x3c3   : > { %1498 = vmatpush.msra.mxu0 %v1974_v38  ;;  %v1597_v43 = vld [vmem:[#allocation5 + $0xb0] sm:$0xff] }
 0x3c4   : > { %v1301_v1 = vmax.f32 %v1293_v52, 0.0 }
 0x3c5   : > { %1499 = vmatpush.msra.mxu0 %v1973_v40 }
 0x3c7   : > { %v1228_v45 = vpop.f32.mrf.mxu1 }
 0x3c8   : > { %v1238_v48 = vadd.f32 %v1228_v45, %v1087_v42  ;;  %v1596_v42 = vld [vmem:[#allocation5 + $0xa8] sm:$0xff] }
 0x3ca   : > { %v1294_v53 = vadd.f32 %v1285_v35, %v1238_v48  ;;  %v1379_v35 = vld [vmem:[%s2844_s8 + $0x18] sm:$0xff] }
 0x3cb   : > { %1561 = vmatpush.msra.mxu1 %v1379_v35 }
 0x3cc   : > { %v1302_v58 = vmax.f32 %v1294_v53, 0.0  ;;  %v2003_v53 = vld [vmem:[%s2844_s8 + $0x50] sm:$0xff] }
 0x3cd   : > { %1562 = vmatpush.msra.mxu1 %v1378_v37 }
 0x3ce   : > { %1343 = vmatpush.msrb.mxu2 %v1302_v58  ;;  %1421 = vmatpush.msrb.mxu3 %v1302_v58 }
 0x3cf   : > { %1563 = vmatpush.msra.mxu1 %v1377_v39 }
 0x3d0   : > { %1344 = vmatpush.msrb.mxu2 %v1301_v1  ;;  %1422 = vmatpush.msrb.mxu3 %v1301_v1 }
 0x3d1   : > { %1564 = vmatpush.msra.mxu1 %v1376_v41 }
 0x3d2   : > { %1345 = vmatpush.msrb.mxu2 %v1300_v3  ;;  %1423 = vmatpush.msrb.mxu3 %v1300_v3 }
 0x3d4   : > { %1346 = vmatpush.msrb.mxu2 %v1299_v7  ;;  %1424 = vmatpush.msrb.mxu3 %v1299_v7 }
 0x3d6   : > { %1347 = vmatpush.msrb.mxu2 %v1298_v9  ;;  %1425 = vmatpush.msrb.mxu3 %v1298_v9 }
 0x3d8   : > { %1348 = vmatpush.msrb.mxu2 %v1297_v61  ;;  %1426 = vmatpush.msrb.mxu3 %v1297_v61 }
 0x3da   : > { %1349 = vmatpush.msrb.mxu2 %v1296_v12  ;;  %1427 = vmatpush.msrb.mxu3 %v1296_v12 }
 0x3dc   : > { %1350 = vmatpush.msrb.mxu2 %v1295_v13  ;;  %1428 = vmatpush.msrb.mxu3 %v1295_v13 }
 0x3dd   : > { %1957 = vmatmul.msk.f32.vlgmr.msrb.gmra.mxu2 %vm814_vm1, %v1303_v14  ;;  %1965 = vmatmul.msk.f32.vlgmr.msrb.gmra.mxu3 %vm814_vm1, %v1381_v15 }
 0x3de   : > { %1631 = vmatpush.msra.mxu2 %v1302_v58  ;;  %1705 = vmatpush.msra.mxu3 %v2004_v50 }
 0x3e0   : > { %1632 = vmatpush.msra.mxu2 %v1301_v1  ;;  %1706 = vmatpush.msra.mxu3 %v2003_v53 }
 0x3e2   : > { %1633 = vmatpush.msra.mxu2 %v1300_v3  ;;  %1707 = vmatpush.msra.mxu3 %v2002_v54 }
 0x3e4   : > { %1634 = vmatpush.msra.mxu2 %v1299_v7  ;;  %1708 = vmatpush.msra.mxu3 %v2001_v57 }
 0x3e5   : > { %1958 = vmatmul.msk.f32.gmra.mxu2 %vm814_vm1, %v1304_v60  ;;  %1966 = vmatmul.msk.f32.gmra.mxu3 %vm814_vm1, %v1382_v16 }
 0x3e6   : > { %1635 = vmatpush.msra.mxu2 %v1298_v9 }
 0x3e8   : > { %1636 = vmatpush.msra.mxu2 %v1297_v61 }
 0x3ea   : > { %1637 = vmatpush.msra.mxu2 %v1296_v12 }
 0x3ec   : > { %1638 = vmatpush.msra.mxu2 %v1295_v13 }
 0x3ed   : > { %1959 = vmatmul.msk.f32.gmra.mxu2 %vm814_vm1, %v1305_v17  ;;  %1967 = vmatmul.msk.f32.gmra.mxu3 %vm814_vm1, %v1383_v18 }
 0x3f5   : > { %1960 = vmatmul.msk.f32.gmra.mxu2 %vm814_vm1, %v1306_v19  ;;  %1968 = vmatmul.msk.f32.gmra.mxu3 %vm814_vm1, %v1384_v20 }
 0x3fd   : > { %1961 = vmatmul.msk.f32.gmra.mxu2 %vm814_vm1, %v1307_v21  ;;  %1969 = vmatmul.msk.f32.gmra.mxu3 %vm814_vm1, %v1385_v22 }
 0x405   : > { %1962 = vmatmul.msk.f32.gmra.mxu2 %vm814_vm1, %v1308_v23  ;;  %1970 = vmatmul.msk.f32.gmra.mxu3 %vm814_vm1, %v1386_v24 }
 0x40d   : > { %1963 = vmatmul.msk.f32.gmra.mxu2 %vm814_vm1, %v1309_v25  ;;  %1971 = vmatmul.msk.f32.gmra.mxu3 %vm814_vm1, %v1387_v26 }
 0x415   : > { %1964 = vmatmul.msk.f32.gmra.mxu2 %vm814_vm1, %v1310_v27  ;;  %1972 = vmatmul.msk.f32.gmra.mxu3 %vm814_vm1, %v1388_v28 }
 0x41d   : > { %1993 = vmatmul.msk.f32.vlgmr.msra.gmra.mxu2 %vm814_vm1, %v1591_v29 }
 0x425   : > { %1994 = vmatmul.msk.f32.gmra.mxu2 %vm814_vm1, %v1592_v30 }
 0x42d   : > { %1995 = vmatmul.msk.f32.gmra.mxu2 %vm814_vm1, %v1593_v31 }
 0x435   : > { %1996 = vmatmul.msk.f32.gmra.mxu2 %vm814_vm1, %v1594_v32 }
 0x43d   : > { %1997 = vmatmul.msk.f32.gmra.mxu2 %vm814_vm1, %v1595_v33 }
 0x445   : > { %1998 = vmatmul.msk.f32.gmra.mxu2 %vm814_vm1, %v1596_v42 }
 0x44d   : > { %1999 = vmatmul.msk.f32.gmra.mxu2 %vm814_vm1, %v1597_v43 }
 0x455   : > { %2000 = vmatmul.msk.f32.gmra.mxu2 %vm814_vm1, %v1598_v44 }
 0x460   : > { %v1352_v45 = vpop.f32.mrf.mxu2  ;;  %v1430_v46 = vpop.f32.mrf.mxu3 }
 0x461   : > { %1977 = vmatmul.msk.f32.vlgmr.msra.gmra.mxu0 %vm1459_vm2, %v1430_v46  ;;  %1985 = vmatmul.msk.f32.vlgmr.msra.gmra.mxu1 %vm1459_vm2, %v1352_v45 }
 0x468   : > { %v1355_v47 = vpop.f32.mrf.mxu2  ;;  %v1433_v48 = vpop.f32.mrf.mxu3 }
 0x469   : > { %1978 = vmatmul.msk.f32.gmra.mxu0 %vm1459_vm2, %v1433_v48  ;;  %1986 = vmatmul.msk.f32.gmra.mxu1 %vm1459_vm2, %v1355_v47 }
 0x470   : > { %v1358_v49 = vpop.f32.mrf.mxu2  ;;  %v1436_v51 = vpop.f32.mrf.mxu3 }
 0x471   : > { %1979 = vmatmul.msk.f32.gmra.mxu0 %vm1459_vm2, %v1436_v51  ;;  %1987 = vmatmul.msk.f32.gmra.mxu1 %vm1459_vm2, %v1358_v49 }
 0x478   : > { %v1361_v52 = vpop.f32.mrf.mxu2  ;;  %v1439_v55 = vpop.f32.mrf.mxu3 }
 0x479   : > { %1980 = vmatmul.msk.f32.gmra.mxu0 %vm1459_vm2, %v1439_v55  ;;  %1988 = vmatmul.msk.f32.gmra.mxu1 %vm1459_vm2, %v1361_v52 }
 0x480   : > { %v1364_v56 = vpop.f32.mrf.mxu2  ;;  %v1442_v58 = vpop.f32.mrf.mxu3 }
 0x481   : > { %1981 = vmatmul.msk.f32.gmra.mxu0 %vm1459_vm2, %v1442_v58  ;;  %1989 = vmatmul.msk.f32.gmra.mxu1 %vm1459_vm2, %v1364_v56 }
 0x488   : > { %v1367_v59 = vpop.f32.mrf.mxu2  ;;  %v1445_v62 = vpop.f32.mrf.mxu3 }
 0x489   : > { %1982 = vmatmul.msk.f32.gmra.mxu0 %vm1459_vm2, %v1445_v62  ;;  %1990 = vmatmul.msk.f32.gmra.mxu1 %vm1459_vm2, %v1367_v59 }
 0x490   : > { %v1370_v63 = vpop.f32.mrf.mxu2  ;;  %v1448_v1 = vpop.f32.mrf.mxu3 }
 0x491   : > { %1983 = vmatmul.msk.f32.gmra.mxu0 %vm1459_vm2, %v1448_v1  ;;  %1991 = vmatmul.msk.f32.gmra.mxu1 %vm1459_vm2, %v1370_v63 }
 0x498   : > { %v1373_v2 = vpop.f32.mrf.mxu2  ;;  %v1451_v4 = vpop.f32.mrf.mxu3 }
 0x499   : > { %1984 = vmatmul.msk.f32.gmra.mxu0 %vm1459_vm2, %v1451_v4  ;;  %1992 = vmatmul.msk.f32.gmra.mxu1 %vm1459_vm2, %v1373_v2 }
 0x4a0   : > { %v1640_v3 = vpop.f32.mrf.mxu2 }
 0x4a1   : > { %2005 = vmatmul.msk.f32.vlgmr.msra.gmra.mxu3 %vm1459_vm2, %v1640_v3 }
 0x4a8   : > { %v1643_v5 = vpop.f32.mrf.mxu2 }
 0x4a9   : > { %2006 = vmatmul.msk.f32.gmra.mxu3 %vm1459_vm2, %v1643_v5 }
 0x4b0   : > { %v1646_v6 = vpop.f32.mrf.mxu2 }
 0x4b1   : > { %2007 = vmatmul.msk.f32.gmra.mxu3 %vm1459_vm2, %v1646_v6 }
 0x4b8   : > { %v1649_v7 = vpop.f32.mrf.mxu2 }
 0x4b9   : > { %2008 = vmatmul.msk.f32.gmra.mxu3 %vm1459_vm2, %v1649_v7 }
 0x4c0   : > { %v1652_v8 = vpop.f32.mrf.mxu2 }
 0x4c1   : > { %2009 = vmatmul.msk.f32.gmra.mxu3 %vm1459_vm2, %v1652_v8 }
 0x4c8   : > { %v1655_v0 = vpop.f32.mrf.mxu2 }
 0x4c9   : > { %2010 = vmatmul.msk.f32.gmra.mxu3 %vm1459_vm2, %v1655_v0 }
 0x4d0   : > { %v1658_v9 = vpop.f32.mrf.mxu2 }
 0x4d1   : > { %2011 = vmatmul.msk.f32.gmra.mxu3 %vm1459_vm2, %v1658_v9 }
 0x4d8   : > { %v1661_v10 = vpop.f32.mrf.mxu2 }
 0x4d9   : > { %2012 = vmatmul.msk.f32.gmra.mxu3 %vm1459_vm2, %v1661_v10 }
 0x4de   : > { %v1501_v11 = vpop.f32.mrf.mxu0  ;;  %v1566_v61 = vpop.f32.mrf.mxu1 }
 0x4df   : > { %v1567_v14 = vadd.f32 %v1566_v61, %v1501_v11 }
 0x4e6   : > { %v1504_v12 = vpop.f32.mrf.mxu0  ;;  %v1569_v13 = vpop.f32.mrf.mxu1 }
 0x4e7   : > { %v1570_v18 = vadd.f32 %v1569_v13, %v1504_v12 }
 0x4ee   : > { %v1507_v60 = vpop.f32.mrf.mxu0  ;;  %v1572_v17 = vpop.f32.mrf.mxu1 }
 0x4ef   : > { %v1573_v23 = vadd.f32 %v1572_v17, %v1507_v60 }
 0x4f6   : > { %v1510_v21 = vpop.f32.mrf.mxu0  ;;  %v1575_v22 = vpop.f32.mrf.mxu1 }
 0x4f7   : > { %v1576_v28 = vadd.f32 %v1575_v22, %v1510_v21 }
 0x4fe   : > { %v1513_v26 = vpop.f32.mrf.mxu0  ;;  %v1578_v27 = vpop.f32.mrf.mxu1 }
 0x4ff   : > { %v1579_v31 = vadd.f32 %v1578_v27, %v1513_v26 }
 0x506   : > { %v1516_v32 = vpop.f32.mrf.mxu0  ;;  %v1581_v33 = vpop.f32.mrf.mxu1 }
 0x507   : > { %v1582_v36 = vadd.f32 %v1581_v33, %v1516_v32 }
 0x50e   : > { %v1519_v39 = vpop.f32.mrf.mxu0  ;;  %v1584_v40 = vpop.f32.mrf.mxu1 }
 0x50f   : > { %v1585_v41 = vadd.f32 %v1584_v40, %v1519_v39 }
 0x516   : > { %v1522_v44 = vpop.f32.mrf.mxu0  ;;  %v1587_v45 = vpop.f32.mrf.mxu1 }
 0x517   : > { %v1588_v46 = vadd.f32 %v1587_v45, %v1522_v44 }
 0x524   : > { %v1710_v15 = vpop.f32.mrf.mxu3 }
 0x525   : > { %v1734_v16 = vadd.f32 %v1710_v15, %v1567_v14 }
 0x527   : > { %1742 = vst.msk [vmem:[%s2784_s21] sm:$0xff] %vm814_vm1, %v1734_v16 }
 0x52c   : > { %v1713_v19 = vpop.f32.mrf.mxu3 }
 0x52d   : > { %v1735_v20 = vadd.f32 %v1713_v19, %v1570_v18 }
 0x52f   : > { %1743 = vst.msk [vmem:[%s2784_s21 + $0x8] sm:$0xff] %vm814_vm1, %v1735_v20 }
 0x534   : > { %v1716_v24 = vpop.f32.mrf.mxu3 }
 0x535   : > { %v1736_v25 = vadd.f32 %v1716_v24, %v1573_v23 }
 0x537   : > { %1744 = vst.msk [vmem:[%s2784_s21 + $0x10] sm:$0xff] %vm814_vm1, %v1736_v25 }
 0x53c   : > { %v1719_v29 = vpop.f32.mrf.mxu3 }
 0x53d   : > { %v1737_v30 = vadd.f32 %v1719_v29, %v1576_v28 }
 0x53f   : > { %1745 = vst.msk [vmem:[%s2784_s21 + $0x18] sm:$0xff] %vm814_vm1, %v1737_v30 }
 0x544   : > { %v1722_v34 = vpop.f32.mrf.mxu3 }
 0x545   : > { %v1738_v35 = vadd.f32 %v1722_v34, %v1579_v31 }
 0x547   : > { %1746 = vst.msk [vmem:[%s2784_s21 + $0x20] sm:$0xff] %vm814_vm1, %v1738_v35 }
 0x54c   : > { %v1725_v37 = vpop.f32.mrf.mxu3 }
 0x54d   : > { %v1739_v38 = vadd.f32 %v1725_v37, %v1582_v36 }
 0x54f   : > { %1747 = vst.msk [vmem:[%s2784_s21 + $0x28] sm:$0xff] %vm814_vm1, %v1739_v38 }
 0x554   : > { %v1728_v42 = vpop.f32.mrf.mxu3 }
 0x555   : > { %v1740_v43 = vadd.f32 %v1728_v42, %v1585_v41 }
 0x557   : > { %1748 = vst.msk [vmem:[%s2784_s21 + $0x30] sm:$0xff] %vm814_vm1, %v1740_v43 }
 0x55c   : > { %v1731_v47 = vpop.f32.mrf.mxu3 }
 0x55d   : > { %v1741_v48 = vadd.f32 %v1731_v47, %v1588_v46 }
 0x55f   : > { %1749 = vst.msk [vmem:[%s2784_s21 + $0x38] sm:$0xff] %vm814_vm1, %v1741_v48 }
 0x560   : > { %2179 = shalt.err (!%p2176_p8)
}
 0x561   : > { %s2229_s24 = smov 128   ;;  %s2230_s21 = smov 8  }
 0x562   : > { %2032 = dma.vmem_to_hbm [thread:$0]  (%p2319_p5), %s1764_s14, 1024, %s1766_s16, %s1751_s13, %s2229_s24, %s2229_s24, %s2230_s21  }
 0x563 PF: > { %p2049_p9 = scmp.ge.s32.totalorder %s2222_s12, 2  ;;  %s1780_s29 = sand.u32 1, %s2210_s30  }
 0x564   : > { %s1781_s23 = scalar_lea.sflag [#allocation4], %s1780_s29 }
 0x565   : > { %p2042_p10 = pnand %p2049_p9, %p2323_p6 }
 0x567   : > { %p2043_p11 = pneg %p2042_p10 }
 0x569   : > { %2205 = dma.done.wait (%p2043_p11), %s1781_s23, 1024  }
 0x56a   : > { %2207 = vsyncadd (%p2043_p11), %s1781_s23, 4294966272  ;;  %p21_p12 = scmp.ge.s32.totalorder %s2306_s15, 4   ;;  %s2849_s30 = smov %s2214_s10 }
 0x56b   : > { %s2850_s10 = smov %s2218_s11  ;;  %s2851_s11 = smov %s2317_s18 }
 0x56c   : > { %s2852_s12 = smov %s2306_s15  ;;  %23 = sbr.rel (!%p21_p12) target bundleno = 5 (0x5), region = 112 }
 0x571   :  { %1787 = vsyncpa [#allocation3], 1 }
 0x572   :  { %1789 = vsyncpa [#allocation3 + $0x1], 1 }
 0x573   :  { %1790 = vsyncpa [#allocation6], 1 }
 0x574   :  { %1791 = vsyncpa [#allocation4], 1 }
 0x575   :  { %1793 = vsyncpa [#allocation4 + $0x1], 1 }

</bundles_post_ra>
